<compile_context>
chip_gen: v7x
topology: tpu7x:2x2x1
jax: 0.10.0
libtpu: 0.0.40
codegen_flags: <defaults>
</compile_context>

<pallas_src>
import functools

import jax
import jax.numpy as jnp
from jax import lax
from jax.experimental import pallas as pl
from jax.experimental.pallas import tpu as pltpu


# ----------------------------------------------------------------------------
# Parameter prep helpers (plain-JAX glue, runs once outside the kernel)
# ----------------------------------------------------------------------------
def _reorder_gate_rows(w):
    """Reorder PyTorch LSTM gate blocks [i, f, g, o] -> [i, f, o, g] (axis 0)."""
    h = w.shape[0] // 4
    return jnp.concatenate([w[: 2 * h], w[3 * h:], w[2 * h: 3 * h]], axis=0)


# ----------------------------------------------------------------------------
# Fused encoder kernel: fc1 + num_layers LSTM layers in a single grid step.
# All tensors are 2D with rows laid out time-major: row block [t*Bp, (t+1)*Bp)
# holds timestep t for the (padded) batch.
# ----------------------------------------------------------------------------
def _encoder_kernel(x_ref, w1t_ref, b1_ref, wih_t_ref, whh_t_ref, b_ref,
                    o_ref, seq_scr, gx_scr,
                    *, seq_len, batch_pad, hidden_dim, num_layers):
    T, Bp, H = seq_len, batch_pad, hidden_dim

    # ---- fc1 over the whole (padded) sequence: one MXU matmul ----------------
    seq_scr[...] = (
        jnp.dot(x_ref[...], w1t_ref[...], preferred_element_type=jnp.float32)
        + b1_ref[...]
    )

    # ---- stacked LSTM layers (static unroll over layers) ---------------------
    for layer in range(num_layers):
        # Hoisted input projection for ALL timesteps in one matmul, bias fused.
        # (Off the sequential critical path.)
        gx_scr[...] = (
            jnp.dot(seq_scr[...], wih_t_ref[layer],
                    preferred_element_type=jnp.float32)
            + b_ref[layer]
        )

        whh_t = whh_t_ref[layer]                  # (H, 4H), vreg/VMEM resident
        # Last layer writes its hidden states straight to the output block.
        dst = o_ref if layer == num_layers - 1 else seq_scr

        def step(t, carry):
            h_prev, c_prev = carry
            off = pl.multiple_of(t * Bp, Bp)      # sublane-aligned row block
            gates = gx_scr[pl.ds(off, Bp), :] + jnp.dot(
                h_prev, whh_t, preferred_element_type=jnp.float32)
            # Gate columns are pre-ordered [ i | f | o | g ]:
            #   one wide sigmoid over 3H lanes, one tanh over H lanes.
            sig = jax.nn.sigmoid(gates[:, : 3 * H])
            g_g = jnp.tanh(gates[:, 3 * H:])
            i_g = sig[:, :H]
            f_g = sig[:, H: 2 * H]
            o_g = sig[:, 2 * H: 3 * H]
            c_new = f_g * c_prev + i_g * g_g
            h_new = o_g * jnp.tanh(c_new)
            dst[pl.ds(off, Bp), :] = h_new.astype(dst.dtype)
            return (h_new, c_new)

        h0 = jnp.zeros((Bp, H), jnp.float32)
        c0 = jnp.zeros((Bp, H), jnp.float32)
        lax.fori_loop(0, T, step, (h0, c0), unroll=True)


# ----------------------------------------------------------------------------
# Encoder forward: one fused pallas_call; only cheap layout glue outside.
# ----------------------------------------------------------------------------
def encoder_forward(x, params, num_layers):
    """x: (B, T, input_dim) -> (B, T, hidden_dim)."""
    B, T, Din = x.shape
    H = params["fc1_w"].shape[0]
    Bp = ((B + 7) // 8) * 8                      # pad batch to sublane multiple

    # Layout glue (tiny XLA ops): time-major, pad batch, flatten to 2D rows.
    x_tm = jnp.transpose(x.astype(jnp.float32), (1, 0, 2))       # (T, B, Din)
    if Bp != B:
        x_tm = jnp.pad(x_tm, ((0, 0), (0, Bp - B), (0, 0)))
    x2d = x_tm.reshape(T * Bp, Din)

    # fc1 weights, pre-transposed.
    w1t = jnp.asarray(params["fc1_w"], jnp.float32).T            # (Din, H)
    b1 = jnp.asarray(params["fc1_b"], jnp.float32).reshape(1, H)

    # LSTM weights: transpose, fuse biases, reorder gate blocks to [i, f, o, g].
    # (bf16 weight casting with f32 accumulation is an option for large H; kept
    #  f32 here — weights are tiny and numerics stay tight.)
    wih_t_l, whh_t_l, bias_l = [], [], []
    for l in range(num_layers):
        w_ih = _reorder_gate_rows(jnp.asarray(params[f"w_ih_l{l}"], jnp.float32))
        w_hh = _reorder_gate_rows(jnp.asarray(params[f"w_hh_l{l}"], jnp.float32))
        b = _reorder_gate_rows(
            jnp.asarray(params[f"b_ih_l{l}"], jnp.float32)
            + jnp.asarray(params[f"b_hh_l{l}"], jnp.float32))
        wih_t_l.append(w_ih.T)                                   # (H, 4H)
        whh_t_l.append(w_hh.T)                                   # (H, 4H)
        bias_l.append(b.reshape(1, 4 * H))
    wih_t = jnp.stack(wih_t_l)                                   # (L, H, 4H)
    whh_t = jnp.stack(whh_t_l)                                   # (L, H, 4H)
    bias = jnp.stack(bias_l)                                     # (L, 1, 4H)

    kernel = functools.partial(
        _encoder_kernel, seq_len=T, batch_pad=Bp, hidden_dim=H,
        num_layers=num_layers)

    out2d = pl.pallas_call(
        kernel,
        out_shape=jax.ShapeDtypeStruct((T * Bp, H), jnp.float32),
        grid=(1,),
        in_specs=[
            pl.BlockSpec((T * Bp, Din), lambda i: (0, 0)),
            pl.BlockSpec((Din, H), lambda i: (0, 0)),
            pl.BlockSpec((1, H), lambda i: (0, 0)),
            pl.BlockSpec((num_layers, H, 4 * H), lambda i: (0, 0, 0)),
            pl.BlockSpec((num_layers, H, 4 * H), lambda i: (0, 0, 0)),
            pl.BlockSpec((num_layers, 1, 4 * H), lambda i: (0, 0, 0)),
        ],
        out_specs=pl.BlockSpec((T * Bp, H), lambda i: (0, 0)),
        scratch_shapes=[
            pltpu.VMEM((T * Bp, H), jnp.float32),        # activation sequence
            pltpu.VMEM((T * Bp, 4 * H), jnp.float32),    # hoisted input gates
        ],
        compiler_params=pltpu.CompilerParams(
            dimension_semantics=("arbitrary",)),
    )(x2d, w1t, b1, wih_t, whh_t, bias)

    out = out2d.reshape(T, Bp, H)[:, :B, :]              # drop batch padding
    return jnp.transpose(out, (1, 0, 2))                 # back to (B, T, H)


# ----------------------------------------------------------------------------
# Deterministic parameter init (PyTorch-style uniform(-1/sqrt(H), 1/sqrt(H)))
# ----------------------------------------------------------------------------
def init_params(key, input_dim, hidden_dim, num_layers):
    params = {}
    k = 1.0 / jnp.sqrt(jnp.float32(hidden_dim))
    keys = jax.random.split(key, 2 + 4 * num_layers)
    params["fc1_w"] = jax.random.uniform(keys[0], (hidden_dim, input_dim),
                                         jnp.float32, -k, k)
    params["fc1_b"] = jax.random.uniform(keys[1], (hidden_dim,),
                                         jnp.float32, -k, k)
    idx = 2
    for layer in range(num_layers):
        in_sz = hidden_dim  # first LSTM layer input is fc1 output (hidden_dim)
        params[f"w_ih_l{layer}"] = jax.random.uniform(
            keys[idx + 0], (4 * hidden_dim, in_sz), jnp.float32, -k, k)
        params[f"w_hh_l{layer}"] = jax.random.uniform(
            keys[idx + 1], (4 * hidden_dim, hidden_dim), jnp.float32, -k, k)
        params[f"b_ih_l{layer}"] = jax.random.uniform(
            keys[idx + 2], (4 * hidden_dim,), jnp.float32, -k, k)
        params[f"b_hh_l{layer}"] = jax.random.uniform(
            keys[idx + 3], (4 * hidden_dim,), jnp.float32, -k, k)
        idx += 4
    return params


# ----------------------------------------------------------------------------
# Pure-JAX reference (PyTorch gate order / semantics) for correctness check
# ----------------------------------------------------------------------------
def encoder_reference(x, params, num_layers):
    hi = jax.lax.Precision.HIGHEST
    B, T, Din = x.shape
    H = params["fc1_w"].shape[0]
    y = jnp.dot(x.reshape(B * T, Din), params["fc1_w"].T, precision=hi) + params["fc1_b"]
    h_seq = y.reshape(B, T, H)

    for layer in range(num_layers):
        w_ih = params[f"w_ih_l{layer}"]
        w_hh = params[f"w_hh_l{layer}"]
        b = params[f"b_ih_l{layer}"] + params[f"b_hh_l{layer}"]

        def step(carry, x_t):
            h, c = carry
            gates = (jnp.dot(x_t, w_ih.T, precision=hi)
                     + jnp.dot(h, w_hh.T, precision=hi) + b)
            i_g, f_g, g_g, o_g = jnp.split(gates, 4, axis=-1)
            i_g = jax.nn.sigmoid(i_g)
            f_g = jax.nn.sigmoid(f_g)
            g_g = jnp.tanh(g_g)
            o_g = jax.nn.sigmoid(o_g)
            c_new = f_g * c + i_g * g_g
            h_new = o_g * jnp.tanh(c_new)
            return (h_new, c_new), h_new

        h0 = jnp.zeros((B, H), jnp.float32)
        c0 = jnp.zeros((B, H), jnp.float32)
        _, outs = jax.lax.scan(step, (h0, c0), h_seq.transpose(1, 0, 2))
        h_seq = outs.transpose(1, 0, 2)
    return h_seq


if __name__ == "__main__":
    BATCH, SEQ, INPUT_DIM, HIDDEN_DIM, NUM_LAYERS = 2, 8, 4, 32, 2

    root = jax.random.PRNGKey(0)
    k_x, k_p = jax.random.split(root)
    x = jax.random.normal(k_x, (BATCH, SEQ, INPUT_DIM), jnp.float32)
    params = init_params(k_p, INPUT_DIM, HIDDEN_DIM, NUM_LAYERS)

    out = encoder_forward(x, params, NUM_LAYERS)
    out = jax.block_until_ready(out)

    assert out.shape == (BATCH, SEQ, HIDDEN_DIM), out.shape

    ref = jax.block_until_ready(encoder_reference(x, params, NUM_LAYERS))
    max_err = float(jnp.max(jnp.abs(out - ref)))
    assert max_err < 1e-2, f"max abs error {max_err}"

    print("KERNEL_OK")
</pallas_src>

<mosaic_0001>
module attributes {stable_mosaic.version = 11 : i64} {
  func.func @_encoder_kernel(%arg0: i32, %arg1: memref<64x4xf32, #tpu.memory_space<vmem>>, %arg2: memref<4x32xf32, #tpu.memory_space<vmem>>, %arg3: memref<1x32xf32, #tpu.memory_space<vmem>>, %arg4: memref<2x32x128xf32, #tpu.memory_space<vmem>>, %arg5: memref<2x32x128xf32, #tpu.memory_space<vmem>>, %arg6: memref<2x1x128xf32, #tpu.memory_space<vmem>>, %arg7: memref<64x32xf32, #tpu.memory_space<vmem>>, %arg8: memref<64x32xf32, #tpu.memory_space<vmem>>, %arg9: memref<64x128xf32, #tpu.memory_space<vmem>>) attributes {dimension_semantics = [#tpu.dimension_semantics<arbitrary>], iteration_bounds = array<i64: 1>, scalar_prefetch = 0 : i64, scratch_operands = 2 : i64, tpu.core_type = #tpu.core_type<tc>, window_params = [{pipeline_mode = #tpu.pipeline_mode<synchronous>, transform_indices = @transform_0, window_bounds = array<i64: 64, 4>}, {pipeline_mode = #tpu.pipeline_mode<synchronous>, transform_indices = @transform_1, window_bounds = array<i64: 4, 32>}, {pipeline_mode = #tpu.pipeline_mode<synchronous>, transform_indices = @transform_2, window_bounds = array<i64: 1, 32>}, {pipeline_mode = #tpu.pipeline_mode<synchronous>, transform_indices = @transform_3, window_bounds = array<i64: 2, 32, 128>}, {pipeline_mode = #tpu.pipeline_mode<synchronous>, transform_indices = @transform_4, window_bounds = array<i64: 2, 32, 128>}, {pipeline_mode = #tpu.pipeline_mode<synchronous>, transform_indices = @transform_5, window_bounds = array<i64: 2, 1, 128>}, {pipeline_mode = #tpu.pipeline_mode<synchronous>, transform_indices = @transform_6, window_bounds = array<i64: 64, 32>}]} {
    %c0 = arith.constant 0 : index
    %c0_0 = arith.constant 0 : index
    %0 = vector.load %arg1[%c0, %c0_0] : memref<64x4xf32, #tpu.memory_space<vmem>>, vector<64x4xf32>
    %c0_1 = arith.constant 0 : index
    %c0_2 = arith.constant 0 : index
    %1 = vector.load %arg2[%c0_1, %c0_2] : memref<4x32xf32, #tpu.memory_space<vmem>>, vector<4x32xf32>
    %cst = arith.constant dense<0.000000e+00> : vector<64x32xf32>
    %2 = tpu.matmul %0, %1, %cst {dimension_numbers = #tpu.dot_dimension_numbers<[1], [0], [0], [1], [0, 0, 1, 1], [], []>} : vector<64x4xf32>, vector<4x32xf32>, vector<64x32xf32> -> vector<64x32xf32>
    %c0_3 = arith.constant 0 : index
    %c0_4 = arith.constant 0 : index
    %3 = vector.load %arg3[%c0_3, %c0_4] : memref<1x32xf32, #tpu.memory_space<vmem>>, vector<1x32xf32>
    %4 = vector.broadcast %3 : vector<1x32xf32> to vector<64x32xf32>
    %5 = arith.addf %2, %4 : vector<64x32xf32>
    %c0_5 = arith.constant 0 : index
    %c0_6 = arith.constant 0 : index
    %6 = vector.load %arg8[%c0_5, %c0_6] : memref<64x32xf32, #tpu.memory_space<vmem>>, vector<64x32xf32>
    tpu.vector_store %arg8[%c0_5, %c0_6], %5 {strides = array<i32>} : memref<64x32xf32, #tpu.memory_space<vmem>>, vector<64x32xf32>,
    %c0_7 = arith.constant 0 : index
    %c0_8 = arith.constant 0 : index
    %7 = vector.load %arg8[%c0_7, %c0_8] : memref<64x32xf32, #tpu.memory_space<vmem>>, vector<64x32xf32>
    %c0_9 = arith.constant 0 : index
    %c0_10 = arith.constant 0 : index
    %c0_11 = arith.constant 0 : index
    %8 = vector.load %arg4[%c0_9, %c0_10, %c0_11] : memref<2x32x128xf32, #tpu.memory_space<vmem>>, vector<1x32x128xf32>
    %9 = vector.shape_cast %8 : vector<1x32x128xf32> to vector<32x128xf32>
    %cst_12 = arith.constant dense<0.000000e+00> : vector<64x128xf32>
    %10 = tpu.matmul %7, %9, %cst_12 {dimension_numbers = #tpu.dot_dimension_numbers<[1], [0], [0], [1], [0, 0, 1, 1], [], []>} : vector<64x32xf32>, vector<32x128xf32>, vector<64x128xf32> -> vector<64x128xf32>
    %c0_13 = arith.constant 0 : index
    %c0_14 = arith.constant 0 : index
    %c0_15 = arith.constant 0 : index
    %11 = vector.load %arg6[%c0_13, %c0_14, %c0_15] : memref<2x1x128xf32, #tpu.memory_space<vmem>>, vector<1x1x128xf32>
    %12 = vector.shape_cast %11 : vector<1x1x128xf32> to vector<1x128xf32>
    %13 = vector.broadcast %12 : vector<1x128xf32> to vector<64x128xf32>
    %14 = arith.addf %10, %13 : vector<64x128xf32>
    %c0_16 = arith.constant 0 : index
    %c0_17 = arith.constant 0 : index
    %15 = vector.load %arg9[%c0_16, %c0_17] : memref<64x128xf32, #tpu.memory_space<vmem>>, vector<64x128xf32>
    tpu.vector_store %arg9[%c0_16, %c0_17], %14 {strides = array<i32>} : memref<64x128xf32, #tpu.memory_space<vmem>>, vector<64x128xf32>,
    %c0_18 = arith.constant 0 : index
    %c0_19 = arith.constant 0 : index
    %c0_20 = arith.constant 0 : index
    %16 = vector.load %arg5[%c0_18, %c0_19, %c0_20] : memref<2x32x128xf32, #tpu.memory_space<vmem>>, vector<1x32x128xf32>
    %17 = vector.shape_cast %16 : vector<1x32x128xf32> to vector<32x128xf32>
    %cst_21 = arith.constant 0.000000e+00 : f32
    %18 = vector.broadcast %cst_21 : f32 to vector<8x32xf32>
    %cst_22 = arith.constant 0.000000e+00 : f32
    %19 = vector.broadcast %cst_22 : f32 to vector<8x32xf32>
    %c0_i32 = arith.constant 0 : i32
    %c8_i32 = arith.constant 8 : i32
    %20 = arith.muli %c0_i32, %c8_i32 : i32
    %21 = tpu.assume_multiple %20, 8 : i32
    %22 = arith.index_cast %21 : i32 to index
    %c0_23 = arith.constant 0 : index
    %23 = vector.load %arg9[%22, %c0_23] : memref<64x128xf32, #tpu.memory_space<vmem>>, vector<8x128xf32>
    %cst_24 = arith.constant dense<0.000000e+00> : vector<8x128xf32>
    %24 = tpu.matmul %18, %17, %cst_24 {dimension_numbers = #tpu.dot_dimension_numbers<[1], [0], [0], [1], [0, 0, 1, 1], [], []>} : vector<8x32xf32>, vector<32x128xf32>, vector<8x128xf32> -> vector<8x128xf32>
    %25 = arith.addf %23, %24 : vector<8x128xf32>
    %26 = vector.extract_strided_slice %25 {offsets = [0, 0], sizes = [8, 96], strides = [1, 1]} : vector<8x128xf32> to vector<8x96xf32>
    %27 = arith.negf %26 : vector<8x96xf32>
    %28 = math.exp %27 : vector<8x96xf32>
    %cst_25 = arith.constant 1.000000e+00 : f32
    %29 = vector.broadcast %cst_25 : f32 to vector<8x96xf32>
    %30 = arith.addf %29, %28 : vector<8x96xf32>
    %31 = arith.divf %29, %30 : vector<8x96xf32>
    %32 = vector.extract_strided_slice %25 {offsets = [0, 96], sizes = [8, 32], strides = [1, 1]} : vector<8x128xf32> to vector<8x32xf32>
    %33 = math.tanh %32 : vector<8x32xf32>
    %34 = vector.extract_strided_slice %31 {offsets = [0, 0], sizes = [8, 32], strides = [1, 1]} : vector<8x96xf32> to vector<8x32xf32>
    %35 = vector.extract_strided_slice %31 {offsets = [0, 32], sizes = [8, 32], strides = [1, 1]} : vector<8x96xf32> to vector<8x32xf32>
    %36 = vector.extract_strided_slice %31 {offsets = [0, 64], sizes = [8, 32], strides = [1, 1]} : vector<8x96xf32> to vector<8x32xf32>
    %37 = arith.mulf %35, %19 : vector<8x32xf32>
    %38 = arith.mulf %34, %33 : vector<8x32xf32>
    %39 = arith.addf %37, %38 : vector<8x32xf32>
    %40 = math.tanh %39 : vector<8x32xf32>
    %41 = arith.mulf %36, %40 : vector<8x32xf32>
    %42 = arith.index_cast %21 : i32 to index
    %c0_26 = arith.constant 0 : index
    %43 = vector.load %arg8[%42, %c0_26] : memref<64x32xf32, #tpu.memory_space<vmem>>, vector<8x32xf32>
    tpu.vector_store %arg8[%42, %c0_26], %41 {strides = array<i32>} : memref<64x32xf32, #tpu.memory_space<vmem>>, vector<8x32xf32>,
    %c1_i32 = arith.constant 1 : i32
    %c8_i32_27 = arith.constant 8 : i32
    %44 = arith.muli %c1_i32, %c8_i32_27 : i32
    %45 = tpu.assume_multiple %44, 8 : i32
    %46 = arith.index_cast %45 : i32 to index
    %c0_28 = arith.constant 0 : index
    %47 = vector.load %arg9[%46, %c0_28] : memref<64x128xf32, #tpu.memory_space<vmem>>, vector<8x128xf32>
    %cst_29 = arith.constant dense<0.000000e+00> : vector<8x128xf32>
    %48 = tpu.matmul %41, %17, %cst_29 {dimension_numbers = #tpu.dot_dimension_numbers<[1], [0], [0], [1], [0, 0, 1, 1], [], []>} : vector<8x32xf32>, vector<32x128xf32>, vector<8x128xf32> -> vector<8x128xf32>
    %49 = arith.addf %47, %48 : vector<8x128xf32>
    %50 = vector.extract_strided_slice %49 {offsets = [0, 0], sizes = [8, 96], strides = [1, 1]} : vector<8x128xf32> to vector<8x96xf32>
    %51 = arith.negf %50 : vector<8x96xf32>
    %52 = math.exp %51 : vector<8x96xf32>
    %cst_30 = arith.constant 1.000000e+00 : f32
    %53 = vector.broadcast %cst_30 : f32 to vector<8x96xf32>
    %54 = arith.addf %53, %52 : vector<8x96xf32>
    %55 = arith.divf %53, %54 : vector<8x96xf32>
    %56 = vector.extract_strided_slice %49 {offsets = [0, 96], sizes = [8, 32], strides = [1, 1]} : vector<8x128xf32> to vector<8x32xf32>
    %57 = math.tanh %56 : vector<8x32xf32>
    %58 = vector.extract_strided_slice %55 {offsets = [0, 0], sizes = [8, 32], strides = [1, 1]} : vector<8x96xf32> to vector<8x32xf32>
    %59 = vector.extract_strided_slice %55 {offsets = [0, 32], sizes = [8, 32], strides = [1, 1]} : vector<8x96xf32> to vector<8x32xf32>
    %60 = vector.extract_strided_slice %55 {offsets = [0, 64], sizes = [8, 32], strides = [1, 1]} : vector<8x96xf32> to vector<8x32xf32>
    %61 = arith.mulf %59, %39 : vector<8x32xf32>
    %62 = arith.mulf %58, %57 : vector<8x32xf32>
    %63 = arith.addf %61, %62 : vector<8x32xf32>
    %64 = math.tanh %63 : vector<8x32xf32>
    %65 = arith.mulf %60, %64 : vector<8x32xf32>
    %66 = arith.index_cast %45 : i32 to index
    %c0_31 = arith.constant 0 : index
    %67 = vector.load %arg8[%66, %c0_31] : memref<64x32xf32, #tpu.memory_space<vmem>>, vector<8x32xf32>
    tpu.vector_store %arg8[%66, %c0_31], %65 {strides = array<i32>} : memref<64x32xf32, #tpu.memory_space<vmem>>, vector<8x32xf32>,
    %c2_i32 = arith.constant 2 : i32
    %c8_i32_32 = arith.constant 8 : i32
    %68 = arith.muli %c2_i32, %c8_i32_32 : i32
    %69 = tpu.assume_multiple %68, 8 : i32
    %70 = arith.index_cast %69 : i32 to index
    %c0_33 = arith.constant 0 : index
    %71 = vector.load %arg9[%70, %c0_33] : memref<64x128xf32, #tpu.memory_space<vmem>>, vector<8x128xf32>
    %cst_34 = arith.constant dense<0.000000e+00> : vector<8x128xf32>
    %72 = tpu.matmul %65, %17, %cst_34 {dimension_numbers = #tpu.dot_dimension_numbers<[1], [0], [0], [1], [0, 0, 1, 1], [], []>} : vector<8x32xf32>, vector<32x128xf32>, vector<8x128xf32> -> vector<8x128xf32>
    %73 = arith.addf %71, %72 : vector<8x128xf32>
    %74 = vector.extract_strided_slice %73 {offsets = [0, 0], sizes = [8, 96], strides = [1, 1]} : vector<8x128xf32> to vector<8x96xf32>
    %75 = arith.negf %74 : vector<8x96xf32>
    %76 = math.exp %75 : vector<8x96xf32>
    %cst_35 = arith.constant 1.000000e+00 : f32
    %77 = vector.broadcast %cst_35 : f32 to vector<8x96xf32>
    %78 = arith.addf %77, %76 : vector<8x96xf32>
    %79 = arith.divf %77, %78 : vector<8x96xf32>
    %80 = vector.extract_strided_slice %73 {offsets = [0, 96], sizes = [8, 32], strides = [1, 1]} : vector<8x128xf32> to vector<8x32xf32>
    %81 = math.tanh %80 : vector<8x32xf32>
    %82 = vector.extract_strided_slice %79 {offsets = [0, 0], sizes = [8, 32], strides = [1, 1]} : vector<8x96xf32> to vector<8x32xf32>
    %83 = vector.extract_strided_slice %79 {offsets = [0, 32], sizes = [8, 32], strides = [1, 1]} : vector<8x96xf32> to vector<8x32xf32>
    %84 = vector.extract_strided_slice %79 {offsets = [0, 64], sizes = [8, 32], strides = [1, 1]} : vector<8x96xf32> to vector<8x32xf32>
    %85 = arith.mulf %83, %63 : vector<8x32xf32>
    %86 = arith.mulf %82, %81 : vector<8x32xf32>
    %87 = arith.addf %85, %86 : vector<8x32xf32>
    %88 = math.tanh %87 : vector<8x32xf32>
    %89 = arith.mulf %84, %88 : vector<8x32xf32>
    %90 = arith.index_cast %69 : i32 to index
    %c0_36 = arith.constant 0 : index
    %91 = vector.load %arg8[%90, %c0_36] : memref<64x32xf32, #tpu.memory_space<vmem>>, vector<8x32xf32>
    tpu.vector_store %arg8[%90, %c0_36], %89 {strides = array<i32>} : memref<64x32xf32, #tpu.memory_space<vmem>>, vector<8x32xf32>,
    %c3_i32 = arith.constant 3 : i32
    %c8_i32_37 = arith.constant 8 : i32
    %92 = arith.muli %c3_i32, %c8_i32_37 : i32
    %93 = tpu.assume_multiple %92, 8 : i32
    %94 = arith.index_cast %93 : i32 to index
    %c0_38 = arith.constant 0 : index
    %95 = vector.load %arg9[%94, %c0_38] : memref<64x128xf32, #tpu.memory_space<vmem>>, vector<8x128xf32>
    %cst_39 = arith.constant dense<0.000000e+00> : vector<8x128xf32>
    %96 = tpu.matmul %89, %17, %cst_39 {dimension_numbers = #tpu.dot_dimension_numbers<[1], [0], [0], [1], [0, 0, 1, 1], [], []>} : vector<8x32xf32>, vector<32x128xf32>, vector<8x128xf32> -> vector<8x128xf32>
    %97 = arith.addf %95, %96 : vector<8x128xf32>
    %98 = vector.extract_strided_slice %97 {offsets = [0, 0], sizes = [8, 96], strides = [1, 1]} : vector<8x128xf32> to vector<8x96xf32>
    %99 = arith.negf %98 : vector<8x96xf32>
    %100 = math.exp %99 : vector<8x96xf32>
    %cst_40 = arith.constant 1.000000e+00 : f32
    %101 = vector.broadcast %cst_40 : f32 to vector<8x96xf32>
    %102 = arith.addf %101, %100 : vector<8x96xf32>
    %103 = arith.divf %101, %102 : vector<8x96xf32>
    %104 = vector.extract_strided_slice %97 {offsets = [0, 96], sizes = [8, 32], strides = [1, 1]} : vector<8x128xf32> to vector<8x32xf32>
    %105 = math.tanh %104 : vector<8x32xf32>
    %106 = vector.extract_strided_slice %103 {offsets = [0, 0], sizes = [8, 32], strides = [1, 1]} : vector<8x96xf32> to vector<8x32xf32>
    %107 = vector.extract_strided_slice %103 {offsets = [0, 32], sizes = [8, 32], strides = [1, 1]} : vector<8x96xf32> to vector<8x32xf32>
    %108 = vector.extract_strided_slice %103 {offsets = [0, 64], sizes = [8, 32], strides = [1, 1]} : vector<8x96xf32> to vector<8x32xf32>
    %109 = arith.mulf %107, %87 : vector<8x32xf32>
    %110 = arith.mulf %106, %105 : vector<8x32xf32>
    %111 = arith.addf %109, %110 : vector<8x32xf32>
    %112 = math.tanh %111 : vector<8x32xf32>
    %113 = arith.mulf %108, %112 : vector<8x32xf32>
    %114 = arith.index_cast %93 : i32 to index
    %c0_41 = arith.constant 0 : index
    %115 = vector.load %arg8[%114, %c0_41] : memref<64x32xf32, #tpu.memory_space<vmem>>, vector<8x32xf32>
    tpu.vector_store %arg8[%114, %c0_41], %113 {strides = array<i32>} : memref<64x32xf32, #tpu.memory_space<vmem>>, vector<8x32xf32>,
    %c4_i32 = arith.constant 4 : i32
    %c8_i32_42 = arith.constant 8 : i32
    %116 = arith.muli %c4_i32, %c8_i32_42 : i32
    %117 = tpu.assume_multiple %116, 8 : i32
    %118 = arith.index_cast %117 : i32 to index
    %c0_43 = arith.constant 0 : index
    %119 = vector.load %arg9[%118, %c0_43] : memref<64x128xf32, #tpu.memory_space<vmem>>, vector<8x128xf32>
    %cst_44 = arith.constant dense<0.000000e+00> : vector<8x128xf32>
    %120 = tpu.matmul %113, %17, %cst_44 {dimension_numbers = #tpu.dot_dimension_numbers<[1], [0], [0], [1], [0, 0, 1, 1], [], []>} : vector<8x32xf32>, vector<32x128xf32>, vector<8x128xf32> -> vector<8x128xf32>
    %121 = arith.addf %119, %120 : vector<8x128xf32>
    %122 = vector.extract_strided_slice %121 {offsets = [0, 0], sizes = [8, 96], strides = [1, 1]} : vector<8x128xf32> to vector<8x96xf32>
    %123 = arith.negf %122 : vector<8x96xf32>
    %124 = math.exp %123 : vector<8x96xf32>
    %cst_45 = arith.constant 1.000000e+00 : f32
    %125 = vector.broadcast %cst_45 : f32 to vector<8x96xf32>
    %126 = arith.addf %125, %124 : vector<8x96xf32>
    %127 = arith.divf %125, %126 : vector<8x96xf32>
    %128 = vector.extract_strided_slice %121 {offsets = [0, 96], sizes = [8, 32], strides = [1, 1]} : vector<8x128xf32> to vector<8x32xf32>
    %129 = math.tanh %128 : vector<8x32xf32>
    %130 = vector.extract_strided_slice %127 {offsets = [0, 0], sizes = [8, 32], strides = [1, 1]} : vector<8x96xf32> to vector<8x32xf32>
    %131 = vector.extract_strided_slice %127 {offsets = [0, 32], sizes = [8, 32], strides = [1, 1]} : vector<8x96xf32> to vector<8x32xf32>
    %132 = vector.extract_strided_slice %127 {offsets = [0, 64], sizes = [8, 32], strides = [1, 1]} : vector<8x96xf32> to vector<8x32xf32>
    %133 = arith.mulf %131, %111 : vector<8x32xf32>
    %134 = arith.mulf %130, %129 : vector<8x32xf32>
    %135 = arith.addf %133, %134 : vector<8x32xf32>
    %136 = math.tanh %135 : vector<8x32xf32>
    %137 = arith.mulf %132, %136 : vector<8x32xf32>
    %138 = arith.index_cast %117 : i32 to index
    %c0_46 = arith.constant 0 : index
    %139 = vector.load %arg8[%138, %c0_46] : memref<64x32xf32, #tpu.memory_space<vmem>>, vector<8x32xf32>
    tpu.vector_store %arg8[%138, %c0_46], %137 {strides = array<i32>} : memref<64x32xf32, #tpu.memory_space<vmem>>, vector<8x32xf32>,
    %c5_i32 = arith.constant 5 : i32
    %c8_i32_47 = arith.constant 8 : i32
    %140 = arith.muli %c5_i32, %c8_i32_47 : i32
    %141 = tpu.assume_multiple %140, 8 : i32
    %142 = arith.index_cast %141 : i32 to index
    %c0_48 = arith.constant 0 : index
    %143 = vector.load %arg9[%142, %c0_48] : memref<64x128xf32, #tpu.memory_space<vmem>>, vector<8x128xf32>
    %cst_49 = arith.constant dense<0.000000e+00> : vector<8x128xf32>
    %144 = tpu.matmul %137, %17, %cst_49 {dimension_numbers = #tpu.dot_dimension_numbers<[1], [0], [0], [1], [0, 0, 1, 1], [], []>} : vector<8x32xf32>, vector<32x128xf32>, vector<8x128xf32> -> vector<8x128xf32>
    %145 = arith.addf %143, %144 : vector<8x128xf32>
    %146 = vector.extract_strided_slice %145 {offsets = [0, 0], sizes = [8, 96], strides = [1, 1]} : vector<8x128xf32> to vector<8x96xf32>
    %147 = arith.negf %146 : vector<8x96xf32>
    %148 = math.exp %147 : vector<8x96xf32>
    %cst_50 = arith.constant 1.000000e+00 : f32
    %149 = vector.broadcast %cst_50 : f32 to vector<8x96xf32>
    %150 = arith.addf %149, %148 : vector<8x96xf32>
    %151 = arith.divf %149, %150 : vector<8x96xf32>
    %152 = vector.extract_strided_slice %145 {offsets = [0, 96], sizes = [8, 32], strides = [1, 1]} : vector<8x128xf32> to vector<8x32xf32>
    %153 = math.tanh %152 : vector<8x32xf32>
    %154 = vector.extract_strided_slice %151 {offsets = [0, 0], sizes = [8, 32], strides = [1, 1]} : vector<8x96xf32> to vector<8x32xf32>
    %155 = vector.extract_strided_slice %151 {offsets = [0, 32], sizes = [8, 32], strides = [1, 1]} : vector<8x96xf32> to vector<8x32xf32>
    %156 = vector.extract_strided_slice %151 {offsets = [0, 64], sizes = [8, 32], strides = [1, 1]} : vector<8x96xf32> to vector<8x32xf32>
    %157 = arith.mulf %155, %135 : vector<8x32xf32>
    %158 = arith.mulf %154, %153 : vector<8x32xf32>
    %159 = arith.addf %157, %158 : vector<8x32xf32>
    %160 = math.tanh %159 : vector<8x32xf32>
    %161 = arith.mulf %156, %160 : vector<8x32xf32>
    %162 = arith.index_cast %141 : i32 to index
    %c0_51 = arith.constant 0 : index
    %163 = vector.load %arg8[%162, %c0_51] : memref<64x32xf32, #tpu.memory_space<vmem>>, vector<8x32xf32>
    tpu.vector_store %arg8[%162, %c0_51], %161 {strides = array<i32>} : memref<64x32xf32, #tpu.memory_space<vmem>>, vector<8x32xf32>,
    %c6_i32 = arith.constant 6 : i32
    %c8_i32_52 = arith.constant 8 : i32
    %164 = arith.muli %c6_i32, %c8_i32_52 : i32
    %165 = tpu.assume_multiple %164, 8 : i32
    %166 = arith.index_cast %165 : i32 to index
    %c0_53 = arith.constant 0 : index
    %167 = vector.load %arg9[%166, %c0_53] : memref<64x128xf32, #tpu.memory_space<vmem>>, vector<8x128xf32>
    %cst_54 = arith.constant dense<0.000000e+00> : vector<8x128xf32>
    %168 = tpu.matmul %161, %17, %cst_54 {dimension_numbers = #tpu.dot_dimension_numbers<[1], [0], [0], [1], [0, 0, 1, 1], [], []>} : vector<8x32xf32>, vector<32x128xf32>, vector<8x128xf32> -> vector<8x128xf32>
    %169 = arith.addf %167, %168 : vector<8x128xf32>
    %170 = vector.extract_strided_slice %169 {offsets = [0, 0], sizes = [8, 96], strides = [1, 1]} : vector<8x128xf32> to vector<8x96xf32>
    %171 = arith.negf %170 : vector<8x96xf32>
    %172 = math.exp %171 : vector<8x96xf32>
    %cst_55 = arith.constant 1.000000e+00 : f32
    %173 = vector.broadcast %cst_55 : f32 to vector<8x96xf32>
    %174 = arith.addf %173, %172 : vector<8x96xf32>
    %175 = arith.divf %173, %174 : vector<8x96xf32>
    %176 = vector.extract_strided_slice %169 {offsets = [0, 96], sizes = [8, 32], strides = [1, 1]} : vector<8x128xf32> to vector<8x32xf32>
    %177 = math.tanh %176 : vector<8x32xf32>
    %178 = vector.extract_strided_slice %175 {offsets = [0, 0], sizes = [8, 32], strides = [1, 1]} : vector<8x96xf32> to vector<8x32xf32>
    %179 = vector.extract_strided_slice %175 {offsets = [0, 32], sizes = [8, 32], strides = [1, 1]} : vector<8x96xf32> to vector<8x32xf32>
    %180 = vector.extract_strided_slice %175 {offsets = [0, 64], sizes = [8, 32], strides = [1, 1]} : vector<8x96xf32> to vector<8x32xf32>
    %181 = arith.mulf %179, %159 : vector<8x32xf32>
    %182 = arith.mulf %178, %177 : vector<8x32xf32>
    %183 = arith.addf %181, %182 : vector<8x32xf32>
    %184 = math.tanh %183 : vector<8x32xf32>
    %185 = arith.mulf %180, %184 : vector<8x32xf32>
    %186 = arith.index_cast %165 : i32 to index
    %c0_56 = arith.constant 0 : index
    %187 = vector.load %arg8[%186, %c0_56] : memref<64x32xf32, #tpu.memory_space<vmem>>, vector<8x32xf32>
    tpu.vector_store %arg8[%186, %c0_56], %185 {strides = array<i32>} : memref<64x32xf32, #tpu.memory_space<vmem>>, vector<8x32xf32>,
    %c7_i32 = arith.constant 7 : i32
    %c8_i32_57 = arith.constant 8 : i32
    %188 = arith.muli %c7_i32, %c8_i32_57 : i32
    %189 = tpu.assume_multiple %188, 8 : i32
    %190 = arith.index_cast %189 : i32 to index
    %c0_58 = arith.constant 0 : index
    %191 = vector.load %arg9[%190, %c0_58] : memref<64x128xf32, #tpu.memory_space<vmem>>, vector<8x128xf32>
    %cst_59 = arith.constant dense<0.000000e+00> : vector<8x128xf32>
    %192 = tpu.matmul %185, %17, %cst_59 {dimension_numbers = #tpu.dot_dimension_numbers<[1], [0], [0], [1], [0, 0, 1, 1], [], []>} : vector<8x32xf32>, vector<32x128xf32>, vector<8x128xf32> -> vector<8x128xf32>
    %193 = arith.addf %191, %192 : vector<8x128xf32>
    %194 = vector.extract_strided_slice %193 {offsets = [0, 0], sizes = [8, 96], strides = [1, 1]} : vector<8x128xf32> to vector<8x96xf32>
    %195 = arith.negf %194 : vector<8x96xf32>
    %196 = math.exp %195 : vector<8x96xf32>
    %cst_60 = arith.constant 1.000000e+00 : f32
    %197 = vector.broadcast %cst_60 : f32 to vector<8x96xf32>
    %198 = arith.addf %197, %196 : vector<8x96xf32>
    %199 = arith.divf %197, %198 : vector<8x96xf32>
    %200 = vector.extract_strided_slice %193 {offsets = [0, 96], sizes = [8, 32], strides = [1, 1]} : vector<8x128xf32> to vector<8x32xf32>
    %201 = math.tanh %200 : vector<8x32xf32>
    %202 = vector.extract_strided_slice %199 {offsets = [0, 0], sizes = [8, 32], strides = [1, 1]} : vector<8x96xf32> to vector<8x32xf32>
    %203 = vector.extract_strided_slice %199 {offsets = [0, 32], sizes = [8, 32], strides = [1, 1]} : vector<8x96xf32> to vector<8x32xf32>
    %204 = vector.extract_strided_slice %199 {offsets = [0, 64], sizes = [8, 32], strides = [1, 1]} : vector<8x96xf32> to vector<8x32xf32>
    %205 = arith.mulf %203, %183 : vector<8x32xf32>
    %206 = arith.mulf %202, %201 : vector<8x32xf32>
    %207 = arith.addf %205, %206 : vector<8x32xf32>
    %208 = math.tanh %207 : vector<8x32xf32>
    %209 = arith.mulf %204, %208 : vector<8x32xf32>
    %210 = arith.index_cast %189 : i32 to index
    %c0_61 = arith.constant 0 : index
    %211 = vector.load %arg8[%210, %c0_61] : memref<64x32xf32, #tpu.memory_space<vmem>>, vector<8x32xf32>
    tpu.vector_store %arg8[%210, %c0_61], %209 {strides = array<i32>} : memref<64x32xf32, #tpu.memory_space<vmem>>, vector<8x32xf32>,
    %c8_i32_62 = arith.constant 8 : i32
    %c0_63 = arith.constant 0 : index
    %c0_64 = arith.constant 0 : index
    %212 = vector.load %arg8[%c0_63, %c0_64] : memref<64x32xf32, #tpu.memory_space<vmem>>, vector<64x32xf32>
    %c1 = arith.constant 1 : index
    %c0_65 = arith.constant 0 : index
    %c0_66 = arith.constant 0 : index
    %213 = vector.load %arg4[%c1, %c0_65, %c0_66] : memref<2x32x128xf32, #tpu.memory_space<vmem>>, vector<1x32x128xf32>
    %214 = vector.shape_cast %213 : vector<1x32x128xf32> to vector<32x128xf32>
    %cst_67 = arith.constant dense<0.000000e+00> : vector<64x128xf32>
    %215 = tpu.matmul %212, %214, %cst_67 {dimension_numbers = #tpu.dot_dimension_numbers<[1], [0], [0], [1], [0, 0, 1, 1], [], []>} : vector<64x32xf32>, vector<32x128xf32>, vector<64x128xf32> -> vector<64x128xf32>
    %c1_68 = arith.constant 1 : index
    %c0_69 = arith.constant 0 : index
    %c0_70 = arith.constant 0 : index
    %216 = vector.load %arg6[%c1_68, %c0_69, %c0_70] : memref<2x1x128xf32, #tpu.memory_space<vmem>>, vector<1x1x128xf32>
    %217 = vector.shape_cast %216 : vector<1x1x128xf32> to vector<1x128xf32>
    %218 = vector.broadcast %217 : vector<1x128xf32> to vector<64x128xf32>
    %219 = arith.addf %215, %218 : vector<64x128xf32>
    %c0_71 = arith.constant 0 : index
    %c0_72 = arith.constant 0 : index
    %220 = vector.load %arg9[%c0_71, %c0_72] : memref<64x128xf32, #tpu.memory_space<vmem>>, vector<64x128xf32>
    tpu.vector_store %arg9[%c0_71, %c0_72], %219 {strides = array<i32>} : memref<64x128xf32, #tpu.memory_space<vmem>>, vector<64x128xf32>,
    %c1_73 = arith.constant 1 : index
    %c0_74 = arith.constant 0 : index
    %c0_75 = arith.constant 0 : index
    %221 = vector.load %arg5[%c1_73, %c0_74, %c0_75] : memref<2x32x128xf32, #tpu.memory_space<vmem>>, vector<1x32x128xf32>
    %222 = vector.shape_cast %221 : vector<1x32x128xf32> to vector<32x128xf32>
    %cst_76 = arith.constant 0.000000e+00 : f32
    %223 = vector.broadcast %cst_76 : f32 to vector<8x32xf32>
    %cst_77 = arith.constant 0.000000e+00 : f32
    %224 = vector.broadcast %cst_77 : f32 to vector<8x32xf32>
    %c0_i32_78 = arith.constant 0 : i32
    %c8_i32_79 = arith.constant 8 : i32
    %225 = arith.muli %c0_i32_78, %c8_i32_79 : i32
    %226 = tpu.assume_multiple %225, 8 : i32
    %227 = arith.index_cast %226 : i32 to index
    %c0_80 = arith.constant 0 : index
    %228 = vector.load %arg9[%227, %c0_80] : memref<64x128xf32, #tpu.memory_space<vmem>>, vector<8x128xf32>
    %cst_81 = arith.constant dense<0.000000e+00> : vector<8x128xf32>
    %229 = tpu.matmul %223, %222, %cst_81 {dimension_numbers = #tpu.dot_dimension_numbers<[1], [0], [0], [1], [0, 0, 1, 1], [], []>} : vector<8x32xf32>, vector<32x128xf32>, vector<8x128xf32> -> vector<8x128xf32>
    %230 = arith.addf %228, %229 : vector<8x128xf32>
    %231 = vector.extract_strided_slice %230 {offsets = [0, 0], sizes = [8, 96], strides = [1, 1]} : vector<8x128xf32> to vector<8x96xf32>
    %232 = arith.negf %231 : vector<8x96xf32>
    %233 = math.exp %232 : vector<8x96xf32>
    %cst_82 = arith.constant 1.000000e+00 : f32
    %234 = vector.broadcast %cst_82 : f32 to vector<8x96xf32>
    %235 = arith.addf %234, %233 : vector<8x96xf32>
    %236 = arith.divf %234, %235 : vector<8x96xf32>
    %237 = vector.extract_strided_slice %230 {offsets = [0, 96], sizes = [8, 32], strides = [1, 1]} : vector<8x128xf32> to vector<8x32xf32>
    %238 = math.tanh %237 : vector<8x32xf32>
    %239 = vector.extract_strided_slice %236 {offsets = [0, 0], sizes = [8, 32], strides = [1, 1]} : vector<8x96xf32> to vector<8x32xf32>
    %240 = vector.extract_strided_slice %236 {offsets = [0, 32], sizes = [8, 32], strides = [1, 1]} : vector<8x96xf32> to vector<8x32xf32>
    %241 = vector.extract_strided_slice %236 {offsets = [0, 64], sizes = [8, 32], strides = [1, 1]} : vector<8x96xf32> to vector<8x32xf32>
    %242 = arith.mulf %240, %224 : vector<8x32xf32>
    %243 = arith.mulf %239, %238 : vector<8x32xf32>
    %244 = arith.addf %242, %243 : vector<8x32xf32>
    %245 = math.tanh %244 : vector<8x32xf32>
    %246 = arith.mulf %241, %245 : vector<8x32xf32>
    %247 = arith.index_cast %226 : i32 to index
    %c0_83 = arith.constant 0 : index
    %248 = vector.load %arg7[%247, %c0_83] : memref<64x32xf32, #tpu.memory_space<vmem>>, vector<8x32xf32>
    tpu.vector_store %arg7[%247, %c0_83], %246 {strides = array<i32>} : memref<64x32xf32, #tpu.memory_space<vmem>>, vector<8x32xf32>,
    %c1_i32_84 = arith.constant 1 : i32
    %c8_i32_85 = arith.constant 8 : i32
    %249 = arith.muli %c1_i32_84, %c8_i32_85 : i32
    %250 = tpu.assume_multiple %249, 8 : i32
    %251 = arith.index_cast %250 : i32 to index
    %c0_86 = arith.constant 0 : index
    %252 = vector.load %arg9[%251, %c0_86] : memref<64x128xf32, #tpu.memory_space<vmem>>, vector<8x128xf32>
    %cst_87 = arith.constant dense<0.000000e+00> : vector<8x128xf32>
    %253 = tpu.matmul %246, %222, %cst_87 {dimension_numbers = #tpu.dot_dimension_numbers<[1], [0], [0], [1], [0, 0, 1, 1], [], []>} : vector<8x32xf32>, vector<32x128xf32>, vector<8x128xf32> -> vector<8x128xf32>
    %254 = arith.addf %252, %253 : vector<8x128xf32>
    %255 = vector.extract_strided_slice %254 {offsets = [0, 0], sizes = [8, 96], strides = [1, 1]} : vector<8x128xf32> to vector<8x96xf32>
    %256 = arith.negf %255 : vector<8x96xf32>
    %257 = math.exp %256 : vector<8x96xf32>
    %cst_88 = arith.constant 1.000000e+00 : f32
    %258 = vector.broadcast %cst_88 : f32 to vector<8x96xf32>
    %259 = arith.addf %258, %257 : vector<8x96xf32>
    %260 = arith.divf %258, %259 : vector<8x96xf32>
    %261 = vector.extract_strided_slice %254 {offsets = [0, 96], sizes = [8, 32], strides = [1, 1]} : vector<8x128xf32> to vector<8x32xf32>
    %262 = math.tanh %261 : vector<8x32xf32>
    %263 = vector.extract_strided_slice %260 {offsets = [0, 0], sizes = [8, 32], strides = [1, 1]} : vector<8x96xf32> to vector<8x32xf32>
    %264 = vector.extract_strided_slice %260 {offsets = [0, 32], sizes = [8, 32], strides = [1, 1]} : vector<8x96xf32> to vector<8x32xf32>
    %265 = vector.extract_strided_slice %260 {offsets = [0, 64], sizes = [8, 32], strides = [1, 1]} : vector<8x96xf32> to vector<8x32xf32>
    %266 = arith.mulf %264, %244 : vector<8x32xf32>
    %267 = arith.mulf %263, %262 : vector<8x32xf32>
    %268 = arith.addf %266, %267 : vector<8x32xf32>
    %269 = math.tanh %268 : vector<8x32xf32>
    %270 = arith.mulf %265, %269 : vector<8x32xf32>
    %271 = arith.index_cast %250 : i32 to index
    %c0_89 = arith.constant 0 : index
    %272 = vector.load %arg7[%271, %c0_89] : memref<64x32xf32, #tpu.memory_space<vmem>>, vector<8x32xf32>
    tpu.vector_store %arg7[%271, %c0_89], %270 {strides = array<i32>} : memref<64x32xf32, #tpu.memory_space<vmem>>, vector<8x32xf32>,
    %c2_i32_90 = arith.constant 2 : i32
    %c8_i32_91 = arith.constant 8 : i32
    %273 = arith.muli %c2_i32_90, %c8_i32_91 : i32
    %274 = tpu.assume_multiple %273, 8 : i32
    %275 = arith.index_cast %274 : i32 to index
    %c0_92 = arith.constant 0 : index
    %276 = vector.load %arg9[%275, %c0_92] : memref<64x128xf32, #tpu.memory_space<vmem>>, vector<8x128xf32>
    %cst_93 = arith.constant dense<0.000000e+00> : vector<8x128xf32>
    %277 = tpu.matmul %270, %222, %cst_93 {dimension_numbers = #tpu.dot_dimension_numbers<[1], [0], [0], [1], [0, 0, 1, 1], [], []>} : vector<8x32xf32>, vector<32x128xf32>, vector<8x128xf32> -> vector<8x128xf32>
    %278 = arith.addf %276, %277 : vector<8x128xf32>
    %279 = vector.extract_strided_slice %278 {offsets = [0, 0], sizes = [8, 96], strides = [1, 1]} : vector<8x128xf32> to vector<8x96xf32>
    %280 = arith.negf %279 : vector<8x96xf32>
    %281 = math.exp %280 : vector<8x96xf32>
    %cst_94 = arith.constant 1.000000e+00 : f32
    %282 = vector.broadcast %cst_94 : f32 to vector<8x96xf32>
    %283 = arith.addf %282, %281 : vector<8x96xf32>
    %284 = arith.divf %282, %283 : vector<8x96xf32>
    %285 = vector.extract_strided_slice %278 {offsets = [0, 96], sizes = [8, 32], strides = [1, 1]} : vector<8x128xf32> to vector<8x32xf32>
    %286 = math.tanh %285 : vector<8x32xf32>
    %287 = vector.extract_strided_slice %284 {offsets = [0, 0], sizes = [8, 32], strides = [1, 1]} : vector<8x96xf32> to vector<8x32xf32>
    %288 = vector.extract_strided_slice %284 {offsets = [0, 32], sizes = [8, 32], strides = [1, 1]} : vector<8x96xf32> to vector<8x32xf32>
    %289 = vector.extract_strided_slice %284 {offsets = [0, 64], sizes = [8, 32], strides = [1, 1]} : vector<8x96xf32> to vector<8x32xf32>
    %290 = arith.mulf %288, %268 : vector<8x32xf32>
    %291 = arith.mulf %287, %286 : vector<8x32xf32>
    %292 = arith.addf %290, %291 : vector<8x32xf32>
    %293 = math.tanh %292 : vector<8x32xf32>
    %294 = arith.mulf %289, %293 : vector<8x32xf32>
    %295 = arith.index_cast %274 : i32 to index
    %c0_95 = arith.constant 0 : index
    %296 = vector.load %arg7[%295, %c0_95] : memref<64x32xf32, #tpu.memory_space<vmem>>, vector<8x32xf32>
    tpu.vector_store %arg7[%295, %c0_95], %294 {strides = array<i32>} : memref<64x32xf32, #tpu.memory_space<vmem>>, vector<8x32xf32>,
    %c3_i32_96 = arith.constant 3 : i32
    %c8_i32_97 = arith.constant 8 : i32
    %297 = arith.muli %c3_i32_96, %c8_i32_97 : i32
    %298 = tpu.assume_multiple %297, 8 : i32
    %299 = arith.index_cast %298 : i32 to index
    %c0_98 = arith.constant 0 : index
    %300 = vector.load %arg9[%299, %c0_98] : memref<64x128xf32, #tpu.memory_space<vmem>>, vector<8x128xf32>
    %cst_99 = arith.constant dense<0.000000e+00> : vector<8x128xf32>
    %301 = tpu.matmul %294, %222, %cst_99 {dimension_numbers = #tpu.dot_dimension_numbers<[1], [0], [0], [1], [0, 0, 1, 1], [], []>} : vector<8x32xf32>, vector<32x128xf32>, vector<8x128xf32> -> vector<8x128xf32>
    %302 = arith.addf %300, %301 : vector<8x128xf32>
    %303 = vector.extract_strided_slice %302 {offsets = [0, 0], sizes = [8, 96], strides = [1, 1]} : vector<8x128xf32> to vector<8x96xf32>
    %304 = arith.negf %303 : vector<8x96xf32>
    %305 = math.exp %304 : vector<8x96xf32>
    %cst_100 = arith.constant 1.000000e+00 : f32
    %306 = vector.broadcast %cst_100 : f32 to vector<8x96xf32>
    %307 = arith.addf %306, %305 : vector<8x96xf32>
    %308 = arith.divf %306, %307 : vector<8x96xf32>
    %309 = vector.extract_strided_slice %302 {offsets = [0, 96], sizes = [8, 32], strides = [1, 1]} : vector<8x128xf32> to vector<8x32xf32>
    %310 = math.tanh %309 : vector<8x32xf32>
    %311 = vector.extract_strided_slice %308 {offsets = [0, 0], sizes = [8, 32], strides = [1, 1]} : vector<8x96xf32> to vector<8x32xf32>
    %312 = vector.extract_strided_slice %308 {offsets = [0, 32], sizes = [8, 32], strides = [1, 1]} : vector<8x96xf32> to vector<8x32xf32>
    %313 = vector.extract_strided_slice %308 {offsets = [0, 64], sizes = [8, 32], strides = [1, 1]} : vector<8x96xf32> to vector<8x32xf32>
    %314 = arith.mulf %312, %292 : vector<8x32xf32>
    %315 = arith.mulf %311, %310 : vector<8x32xf32>
    %316 = arith.addf %314, %315 : vector<8x32xf32>
    %317 = math.tanh %316 : vector<8x32xf32>
    %318 = arith.mulf %313, %317 : vector<8x32xf32>
    %319 = arith.index_cast %298 : i32 to index
    %c0_101 = arith.constant 0 : index
    %320 = vector.load %arg7[%319, %c0_101] : memref<64x32xf32, #tpu.memory_space<vmem>>, vector<8x32xf32>
    tpu.vector_store %arg7[%319, %c0_101], %318 {strides = array<i32>} : memref<64x32xf32, #tpu.memory_space<vmem>>, vector<8x32xf32>,
    %c4_i32_102 = arith.constant 4 : i32
    %c8_i32_103 = arith.constant 8 : i32
    %321 = arith.muli %c4_i32_102, %c8_i32_103 : i32
    %322 = tpu.assume_multiple %321, 8 : i32
    %323 = arith.index_cast %322 : i32 to index
    %c0_104 = arith.constant 0 : index
    %324 = vector.load %arg9[%323, %c0_104] : memref<64x128xf32, #tpu.memory_space<vmem>>, vector<8x128xf32>
    %cst_105 = arith.constant dense<0.000000e+00> : vector<8x128xf32>
    %325 = tpu.matmul %318, %222, %cst_105 {dimension_numbers = #tpu.dot_dimension_numbers<[1], [0], [0], [1], [0, 0, 1, 1], [], []>} : vector<8x32xf32>, vector<32x128xf32>, vector<8x128xf32> -> vector<8x128xf32>
    %326 = arith.addf %324, %325 : vector<8x128xf32>
    %327 = vector.extract_strided_slice %326 {offsets = [0, 0], sizes = [8, 96], strides = [1, 1]} : vector<8x128xf32> to vector<8x96xf32>
    %328 = arith.negf %327 : vector<8x96xf32>
    %329 = math.exp %328 : vector<8x96xf32>
    %cst_106 = arith.constant 1.000000e+00 : f32
    %330 = vector.broadcast %cst_106 : f32 to vector<8x96xf32>
    %331 = arith.addf %330, %329 : vector<8x96xf32>
    %332 = arith.divf %330, %331 : vector<8x96xf32>
    %333 = vector.extract_strided_slice %326 {offsets = [0, 96], sizes = [8, 32], strides = [1, 1]} : vector<8x128xf32> to vector<8x32xf32>
    %334 = math.tanh %333 : vector<8x32xf32>
    %335 = vector.extract_strided_slice %332 {offsets = [0, 0], sizes = [8, 32], strides = [1, 1]} : vector<8x96xf32> to vector<8x32xf32>
    %336 = vector.extract_strided_slice %332 {offsets = [0, 32], sizes = [8, 32], strides = [1, 1]} : vector<8x96xf32> to vector<8x32xf32>
    %337 = vector.extract_strided_slice %332 {offsets = [0, 64], sizes = [8, 32], strides = [1, 1]} : vector<8x96xf32> to vector<8x32xf32>
    %338 = arith.mulf %336, %316 : vector<8x32xf32>
    %339 = arith.mulf %335, %334 : vector<8x32xf32>
    %340 = arith.addf %338, %339 : vector<8x32xf32>
    %341 = math.tanh %340 : vector<8x32xf32>
    %342 = arith.mulf %337, %341 : vector<8x32xf32>
    %343 = arith.index_cast %322 : i32 to index
    %c0_107 = arith.constant 0 : index
    %344 = vector.load %arg7[%343, %c0_107] : memref<64x32xf32, #tpu.memory_space<vmem>>, vector<8x32xf32>
    tpu.vector_store %arg7[%343, %c0_107], %342 {strides = array<i32>} : memref<64x32xf32, #tpu.memory_space<vmem>>, vector<8x32xf32>,
    %c5_i32_108 = arith.constant 5 : i32
    %c8_i32_109 = arith.constant 8 : i32
    %345 = arith.muli %c5_i32_108, %c8_i32_109 : i32
    %346 = tpu.assume_multiple %345, 8 : i32
    %347 = arith.index_cast %346 : i32 to index
    %c0_110 = arith.constant 0 : index
    %348 = vector.load %arg9[%347, %c0_110] : memref<64x128xf32, #tpu.memory_space<vmem>>, vector<8x128xf32>
    %cst_111 = arith.constant dense<0.000000e+00> : vector<8x128xf32>
    %349 = tpu.matmul %342, %222, %cst_111 {dimension_numbers = #tpu.dot_dimension_numbers<[1], [0], [0], [1], [0, 0, 1, 1], [], []>} : vector<8x32xf32>, vector<32x128xf32>, vector<8x128xf32> -> vector<8x128xf32>
    %350 = arith.addf %348, %349 : vector<8x128xf32>
    %351 = vector.extract_strided_slice %350 {offsets = [0, 0], sizes = [8, 96], strides = [1, 1]} : vector<8x128xf32> to vector<8x96xf32>
    %352 = arith.negf %351 : vector<8x96xf32>
    %353 = math.exp %352 : vector<8x96xf32>
    %cst_112 = arith.constant 1.000000e+00 : f32
    %354 = vector.broadcast %cst_112 : f32 to vector<8x96xf32>
    %355 = arith.addf %354, %353 : vector<8x96xf32>
    %356 = arith.divf %354, %355 : vector<8x96xf32>
    %357 = vector.extract_strided_slice %350 {offsets = [0, 96], sizes = [8, 32], strides = [1, 1]} : vector<8x128xf32> to vector<8x32xf32>
    %358 = math.tanh %357 : vector<8x32xf32>
    %359 = vector.extract_strided_slice %356 {offsets = [0, 0], sizes = [8, 32], strides = [1, 1]} : vector<8x96xf32> to vector<8x32xf32>
    %360 = vector.extract_strided_slice %356 {offsets = [0, 32], sizes = [8, 32], strides = [1, 1]} : vector<8x96xf32> to vector<8x32xf32>
    %361 = vector.extract_strided_slice %356 {offsets = [0, 64], sizes = [8, 32], strides = [1, 1]} : vector<8x96xf32> to vector<8x32xf32>
    %362 = arith.mulf %360, %340 : vector<8x32xf32>
    %363 = arith.mulf %359, %358 : vector<8x32xf32>
    %364 = arith.addf %362, %363 : vector<8x32xf32>
    %365 = math.tanh %364 : vector<8x32xf32>
    %366 = arith.mulf %361, %365 : vector<8x32xf32>
    %367 = arith.index_cast %346 : i32 to index
    %c0_113 = arith.constant 0 : index
    %368 = vector.load %arg7[%367, %c0_113] : memref<64x32xf32, #tpu.memory_space<vmem>>, vector<8x32xf32>
    tpu.vector_store %arg7[%367, %c0_113], %366 {strides = array<i32>} : memref<64x32xf32, #tpu.memory_space<vmem>>, vector<8x32xf32>,
    %c6_i32_114 = arith.constant 6 : i32
    %c8_i32_115 = arith.constant 8 : i32
    %369 = arith.muli %c6_i32_114, %c8_i32_115 : i32
    %370 = tpu.assume_multiple %369, 8 : i32
    %371 = arith.index_cast %370 : i32 to index
    %c0_116 = arith.constant 0 : index
    %372 = vector.load %arg9[%371, %c0_116] : memref<64x128xf32, #tpu.memory_space<vmem>>, vector<8x128xf32>
    %cst_117 = arith.constant dense<0.000000e+00> : vector<8x128xf32>
    %373 = tpu.matmul %366, %222, %cst_117 {dimension_numbers = #tpu.dot_dimension_numbers<[1], [0], [0], [1], [0, 0, 1, 1], [], []>} : vector<8x32xf32>, vector<32x128xf32>, vector<8x128xf32> -> vector<8x128xf32>
    %374 = arith.addf %372, %373 : vector<8x128xf32>
    %375 = vector.extract_strided_slice %374 {offsets = [0, 0], sizes = [8, 96], strides = [1, 1]} : vector<8x128xf32> to vector<8x96xf32>
    %376 = arith.negf %375 : vector<8x96xf32>
    %377 = math.exp %376 : vector<8x96xf32>
    %cst_118 = arith.constant 1.000000e+00 : f32
    %378 = vector.broadcast %cst_118 : f32 to vector<8x96xf32>
    %379 = arith.addf %378, %377 : vector<8x96xf32>
    %380 = arith.divf %378, %379 : vector<8x96xf32>
    %381 = vector.extract_strided_slice %374 {offsets = [0, 96], sizes = [8, 32], strides = [1, 1]} : vector<8x128xf32> to vector<8x32xf32>
    %382 = math.tanh %381 : vector<8x32xf32>
    %383 = vector.extract_strided_slice %380 {offsets = [0, 0], sizes = [8, 32], strides = [1, 1]} : vector<8x96xf32> to vector<8x32xf32>
    %384 = vector.extract_strided_slice %380 {offsets = [0, 32], sizes = [8, 32], strides = [1, 1]} : vector<8x96xf32> to vector<8x32xf32>
    %385 = vector.extract_strided_slice %380 {offsets = [0, 64], sizes = [8, 32], strides = [1, 1]} : vector<8x96xf32> to vector<8x32xf32>
    %386 = arith.mulf %384, %364 : vector<8x32xf32>
    %387 = arith.mulf %383, %382 : vector<8x32xf32>
    %388 = arith.addf %386, %387 : vector<8x32xf32>
    %389 = math.tanh %388 : vector<8x32xf32>
    %390 = arith.mulf %385, %389 : vector<8x32xf32>
    %391 = arith.index_cast %370 : i32 to index
    %c0_119 = arith.constant 0 : index
    %392 = vector.load %arg7[%391, %c0_119] : memref<64x32xf32, #tpu.memory_space<vmem>>, vector<8x32xf32>
    tpu.vector_store %arg7[%391, %c0_119], %390 {strides = array<i32>} : memref<64x32xf32, #tpu.memory_space<vmem>>, vector<8x32xf32>,
    %c7_i32_120 = arith.constant 7 : i32
    %c8_i32_121 = arith.constant 8 : i32
    %393 = arith.muli %c7_i32_120, %c8_i32_121 : i32
    %394 = tpu.assume_multiple %393, 8 : i32
    %395 = arith.index_cast %394 : i32 to index
    %c0_122 = arith.constant 0 : index
    %396 = vector.load %arg9[%395, %c0_122] : memref<64x128xf32, #tpu.memory_space<vmem>>, vector<8x128xf32>
    %cst_123 = arith.constant dense<0.000000e+00> : vector<8x128xf32>
    %397 = tpu.matmul %390, %222, %cst_123 {dimension_numbers = #tpu.dot_dimension_numbers<[1], [0], [0], [1], [0, 0, 1, 1], [], []>} : vector<8x32xf32>, vector<32x128xf32>, vector<8x128xf32> -> vector<8x128xf32>
    %398 = arith.addf %396, %397 : vector<8x128xf32>
    %399 = vector.extract_strided_slice %398 {offsets = [0, 0], sizes = [8, 96], strides = [1, 1]} : vector<8x128xf32> to vector<8x96xf32>
    %400 = arith.negf %399 : vector<8x96xf32>
    %401 = math.exp %400 : vector<8x96xf32>
    %cst_124 = arith.constant 1.000000e+00 : f32
    %402 = vector.broadcast %cst_124 : f32 to vector<8x96xf32>
    %403 = arith.addf %402, %401 : vector<8x96xf32>
    %404 = arith.divf %402, %403 : vector<8x96xf32>
    %405 = vector.extract_strided_slice %398 {offsets = [0, 96], sizes = [8, 32], strides = [1, 1]} : vector<8x128xf32> to vector<8x32xf32>
    %406 = math.tanh %405 : vector<8x32xf32>
    %407 = vector.extract_strided_slice %404 {offsets = [0, 0], sizes = [8, 32], strides = [1, 1]} : vector<8x96xf32> to vector<8x32xf32>
    %408 = vector.extract_strided_slice %404 {offsets = [0, 32], sizes = [8, 32], strides = [1, 1]} : vector<8x96xf32> to vector<8x32xf32>
    %409 = vector.extract_strided_slice %404 {offsets = [0, 64], sizes = [8, 32], strides = [1, 1]} : vector<8x96xf32> to vector<8x32xf32>
    %410 = arith.mulf %408, %388 : vector<8x32xf32>
    %411 = arith.mulf %407, %406 : vector<8x32xf32>
    %412 = arith.addf %410, %411 : vector<8x32xf32>
    %413 = math.tanh %412 : vector<8x32xf32>
    %414 = arith.mulf %409, %413 : vector<8x32xf32>
    %415 = arith.index_cast %394 : i32 to index
    %c0_125 = arith.constant 0 : index
    %416 = vector.load %arg7[%415, %c0_125] : memref<64x32xf32, #tpu.memory_space<vmem>>, vector<8x32xf32>
    tpu.vector_store %arg7[%415, %c0_125], %414 {strides = array<i32>} : memref<64x32xf32, #tpu.memory_space<vmem>>, vector<8x32xf32>,
    %c8_i32_126 = arith.constant 8 : i32
    return
  }
  func.func @transform_0(%arg0: i32) -> (i32, i32) {
    %c0_i32 = arith.constant 0 : i32
    %c0_i32_0 = arith.constant 0 : i32
    %c0_i32_1 = arith.constant 0 : i32
    return %c0_i32, %c0_i32_0 : i32, i32
  }
  func.func @transform_1(%arg0: i32) -> (i32, i32) {
    %c0_i32 = arith.constant 0 : i32
    %c0_i32_0 = arith.constant 0 : i32
    %c0_i32_1 = arith.constant 0 : i32
    return %c0_i32, %c0_i32_0 : i32, i32
  }
  func.func @transform_2(%arg0: i32) -> (i32, i32) {
    %c0_i32 = arith.constant 0 : i32
    %c0_i32_0 = arith.constant 0 : i32
    %c0_i32_1 = arith.constant 0 : i32
    return %c0_i32, %c0_i32_0 : i32, i32
  }
  func.func @transform_3(%arg0: i32) -> (i32, i32, i32) {
    %c0_i32 = arith.constant 0 : i32
    %c0_i32_0 = arith.constant 0 : i32
    %c0_i32_1 = arith.constant 0 : i32
    %c0_i32_2 = arith.constant 0 : i32
    return %c0_i32, %c0_i32_0, %c0_i32_1 : i32, i32, i32
  }
  func.func @transform_4(%arg0: i32) -> (i32, i32, i32) {
    %c0_i32 = arith.constant 0 : i32
    %c0_i32_0 = arith.constant 0 : i32
    %c0_i32_1 = arith.constant 0 : i32
    %c0_i32_2 = arith.constant 0 : i32
    return %c0_i32, %c0_i32_0, %c0_i32_1 : i32, i32, i32
  }
  func.func @transform_5(%arg0: i32) -> (i32, i32, i32) {
    %c0_i32 = arith.constant 0 : i32
    %c0_i32_0 = arith.constant 0 : i32
    %c0_i32_1 = arith.constant 0 : i32
    %c0_i32_2 = arith.constant 0 : i32
    return %c0_i32, %c0_i32_0, %c0_i32_1 : i32, i32, i32
  }
  func.func @transform_6(%arg0: i32) -> (i32, i32) {
    %c0_i32 = arith.constant 0 : i32
    %c0_i32_0 = arith.constant 0 : i32
    %c0_i32_1 = arith.constant 0 : i32
    return %c0_i32, %c0_i32_0 : i32, i32
  }
}

</mosaic_0001>

<bundles_post_ra>
// kernel: tpu_custom_call.1
= control target key start
LH: loop header
LB: loop body
LE: loop exit
PB: predicated region body
PF: predicated region fallthrough
CT: control target
= control target key end

     0   :  { %11 = vsyncpa [#allocation5], 0  ;;  %s2877_s21 = smov [#allocation4]   ;;  %s3311_s0 = inlined_call_operand.vmem [shape: f32[64,4], index: 0, kind: input, shape index: {}]   ;;  %s3312_s1 = inlined_call_operand.vmem [shape: f32[4,32], index: 1, kind: input, shape index: {}]   ;;  %s3313_s2 = inlined_call_operand.vmem [shape: f32[1,32], index: 2, kind: input, shape index: {}]   ;;  %s3314_s3 = inlined_call_operand.vmem [shape: f32[2,32,128], index: 3, kind: input, shape index: {}]   ;;  %s3315_s4 = inlined_call_operand.hbm [shape: f32[2,32,128], index: 4, kind: input, shape index: {}]   ;;  %s3316_s5 = inlined_call_operand.vmem [shape: f32[2,1,128], index: 5, kind: input, shape index: {}]   ;;  %s3317_s6 = inlined_call_operand.vmem [shape: f32[64,32], index: 6, kind: output, shape index: {}]  }
   0x1   :  { %s25_s22 = sshll.u32 %s2877_s21, 4  ;;  %s2853_s25 = scalar_lea.hbm %s3315_s4, 1024  ;;  %s26_s22 = int_to_ptr.vmem [resolvable:$true] %s25_s22 }
   0x2   :  { %p2854_p0 = scmp.ne.s32.totalorder %s3315_s4, %s2853_s25  ;;  %p2857_p1 = scmp.lt.u32.totalorder %s2853_s25, %s3315_s4 }
   0x4   :  { %p2859_p2 = pnand %p2857_p1, %p2854_p0 }
   0x6   :  { %2862 = shalt.err (!%p2859_p2)
}
   0x7   :  { %s2863_s30 = scalar_lea.vmem %s26_s22, 1024  ;;  %p2868_p4 = scmp.lt.s32.totalorder %s26_s22, %s26_s22 }
   0x8   :  { %p2864_p3 = scmp.ne.s32.totalorder %s26_s22, %s2863_s30  ;;  %p2869_p5 = scmp.lt.s32.totalorder %s2863_s30, %s2863_s30 }
   0xa   :  { %p2870_p6 = por %p2869_p5, %p2868_p4 }
   0xc   :  { %p2871_p7 = pnand %p2870_p6, %p2864_p3 }
   0xe   :  { %2874 = shalt.err (!%p2871_p7)
}
   0xf   :  { %s2878_s7 = smov 128   ;;  %s2879_s8 = smov 8  }
  0x10   :  { %31 = dma.hbm_to_vmem [thread:$0]  %s3315_s4, 1024, %s26_s22, [#allocation5], %s2878_s7, %s2878_s7, %s2879_s8  }
  0x11   :  { %2875 = dma.done.wait [#allocation5], 1024  }
  0x12   :  { %2876 = vsyncadd [#allocation5], 4294966272  ;;  %vm78_vm0 = vcmask 1043456   ;;  %vm53_vm1 = vcmask 31744   ;;  %v45_v0 = vld [vmem:[%s3312_s1] sm:$0xf] }
  0x13   :  { %v37_v1 = vld [vmem:[%s3311_s0] sm:$0xff]  ;;  %v38_v2 = vld [vmem:[%s3311_s0 + $0x8] sm:$0xff]  ;;  %2375 = vmatprep.subr.msk.mxu0 %vm78_vm0, %v45_v0  ;;  %v2880_v3 = vmov 0.0|0.0   ;;  %v39_v4 = vld [vmem:[%s3311_s0 + $0x10] sm:$0xff]  ;;  %vm2881_vm2 = vmmov 0   ;;  %v2882_v22 = vmov 0.0  }
  0x14   :  { %2377 = vmatprep.mubr.msk.f32.mxu0 %vm53_vm1, %v37_v1  ;;  %2376 = vmatpush3.msk.msra.mxu0 %vm78_vm0, %v45_v0  ;;  %v40_v5 = vld [vmem:[%s3311_s0 + $0x18] sm:$0xff]  ;;  %v204_v6 = vld [vmem:[%s3314_s3] sm:$0xff]  ;;  %v205_v7 = vld [vmem:[%s3314_s3 + $0x8] sm:$0xff]  ;;  %vm187_vm3 = vcmask 261120   ;;  %s2883_s13 = smov 32   ;;  %s2884_s14 = smov 64  }
  0x15   :  { %2378 = vmatmul.mubr.msk.f32.vlgmr.msra.gmra.mrb[0].mxu0 %vm53_vm1, %v38_v2  ;;  %2613 = vmatprep.subr.bf16.mxu0 %v2880_v3  ;;  %v352_v8 = vld [vmem:[#allocation4] sm:$0xff]  ;;  %v353_v9 = vld [vmem:[#allocation4 + $0x8] sm:$0xff]  ;;  %v2605_v11 = vpack.c.bf16 %v205_v7, %v204_v6  ;;  %v43_v14 = vld [vmem:[%s3311_s0 + $0x30] sm:$0xff] }
  0x16   :  { %2380 = vmatprep.mubr.msk.f32.mxu0 %vm53_vm1, %v39_v4  ;;  %v41_v10 = vld [vmem:[%s3311_s0 + $0x20] sm:$0xff]  ;;  %v2961_v12 = vpack.c.bf16 %v353_v9, %v352_v8  ;;  %v42_v13 = vld [vmem:[%s3311_s0 + $0x28] sm:$0xff]  ;;  %v354_v15 = vld [vmem:[#allocation4 + $0x10] sm:$0xff] }
  0x17   :  { %2606 = vmatprep.subr.bf16.mxu1 %v2605_v11  ;;  %v355_v16 = vld [vmem:[#allocation4 + $0x18] sm:$0xff]  ;;  %v206_v17 = vld [vmem:[%s3314_s3 + $0x10] sm:$0xff]  ;;  %v2192_v23 = vld [vmem:[%s3313_s2] ss:$0 sm:$0xff] }
  0x18   :  { %2615 = vmatpush3.bf16.msra.mxu0 %v2961_v12  ;;  %2608 = vmatpush3.bf16.msra.mxu1 %v2605_v11  ;;  %v2975_v18 = vpack.c.bf16 %v355_v16, %v354_v15  ;;  %v44_v19 = vld [vmem:[%s3311_s0 + $0x38] sm:$0xff]  ;;  %v3026_v50 = vld [vmem:[%s3316_s5] ss:$0 sm:$0xff] }
  0x19   :  { %2381 = vmatmul.mubr.msk.f32.gmra.mrb[2].mxu0 %vm53_vm1, %v40_v5  ;;  %v207_v20 = vld [vmem:[%s3314_s3 + $0x18] sm:$0xff]  ;;  %2616 = vmatprep.subr.bf16.mxu0 %v2880_v3 }
  0x1a   :  { %2383 = vmatprep.mubr.msk.f32.mxu0 %vm53_vm1, %v41_v10  ;;  %v2609_v21 = vpack.c.bf16 %v207_v20, %v206_v17 }
  0x1c   :  { %2610 = vmatprep.subr.bf16.mxu1 %v2609_v21  ;;  %2618 = vmatpush3.bf16.msra.mxu0 %v2975_v18 }
  0x1d   :  { %2384 = vmatmul.mubr.msk.f32.gmra.mrb[4].mxu0 %vm53_vm1, %v42_v13  ;;  %2612 = vmatpush3.bf16.msra.mxu1 %v2609_v21 }
  0x1e   :  { %2386 = vmatprep.mubr.msk.f32.mxu0 %vm53_vm1, %v43_v14  ;;  %2619 = vmatprep.subr.bf16.mxu1 %v2880_v3 }
  0x1f   :  { %2625 = vmatprep.subr.bf16.mxu0 %v2880_v3 }
  0x21   :  { %2387 = vmatmul.mubr.msk.f32.gmra.mrb[6].mxu0 %vm53_vm1, %v44_v19 }
  0x22   :  { %2417 = vmatprep.mubr.msk.f32.mxu0 %vm2881_vm2, %v2882_v22 }
  0x25   :  { %2418 = vmatmul.mubr.f32.vlgmr.msra.gmra.mrb[8].mxu0 %v2882_v22 }
  0x26   :  { %2627 = vmatpush3.bf16.msra.mxu0 %v2961_v12  ;;  %2439 = vmatprep.mubr.msk.f32.mxu0 %vm2881_vm2, %v2882_v22 }
  0x27   :  { %2628 = vmatprep.subr.bf16.mxu0 %v2880_v3 }
  0x2a   :  { %2630 = vmatpush3.bf16.msra.mxu0 %v2975_v18 }
  0x2b   :  { %2637 = vmatprep.subr.bf16.mxu0 %v2880_v3 }
  0xe8   :  { %v2379_v24 = vpop.f32.mrb[0].mxu0 }
  0xe9   :  { %v154_v25 = vadd.f32 %v2379_v24, %v2192_v23  ;;  %v148_v26 = vpop.f32.mrb[1].mxu0 }
  0xea   :  { %v149_v27 = vadd.f32 %v2192_v23, %v148_v26 }
  0xeb   :  { %189 = vst.msk [vmem:[#allocation2 + $0x8] sm:$0xff] %vm187_vm3, %v154_v25 }
  0xec   :  { %188 = vst.msk [vmem:[#allocation2] sm:$0xff] %vm187_vm3, %v149_v27  ;;  %v2382_v30 = vpop.f32.mrb[2].mxu0 }
  0xed   :  { %v164_v31 = vadd.f32 %v2382_v30, %v2192_v23  ;;  %v158_v32 = vpop.f32.mrb[3].mxu0 }
  0xee   :  { %v159_v33 = vadd.f32 %v2192_v23, %v158_v32 }
  0xef   :  { %191 = vst.msk [vmem:[#allocation2 + $0x18] sm:$0xff] %vm187_vm3, %v164_v31 }
  0xf0   :  { %190 = vst.msk [vmem:[#allocation2 + $0x10] sm:$0xff] %vm187_vm3, %v159_v33  ;;  %v2385_v34 = vpop.f32.mrb[4].mxu0 }
  0xf1   :  { %v174_v35 = vadd.f32 %v2385_v34, %v2192_v23  ;;  %v168_v36 = vpop.f32.mrb[5].mxu0 }
  0xf2   :  { %v197_v29 = vld [vmem:[#allocation2 + $0x8] sm:$0xff]  ;;  %v169_v37 = vadd.f32 %v2192_v23, %v168_v36 }
  0xf3   :  { %v196_v28 = vld [vmem:[#allocation2] sm:$0xff]  ;;  %193 = vst.msk [vmem:[#allocation2 + $0x28] sm:$0xff] %vm187_vm3, %v174_v35 }
  0xf4   :  { %2397 = vmatprep.mubr.msk.f32.mxu1 %vm187_vm3, %v196_v28  ;;  %192 = vst.msk [vmem:[#allocation2 + $0x20] sm:$0xff] %vm187_vm3, %v169_v37  ;;  %v2388_v38 = vpop.f32.mrb[6].mxu0 }
  0xf5   :  { %2398 = vmatmul.mubr.msk.f32.vlgmr.msra.gmra.mrb[0].mxu1 %vm187_vm3, %v197_v29  ;;  %v184_v39 = vadd.f32 %v2388_v38, %v2192_v23  ;;  %v178_v40 = vpop.f32.mrb[7].mxu0 }
  0xf6   :  { %2621 = vmatpush3.bf16.msra.mxu1 %v2961_v12  ;;  %v179_v41 = vadd.f32 %v2192_v23, %v178_v40  ;;  %v199_v43 = vld [vmem:[#allocation2 + $0x18] sm:$0xff] }
  0xf7   :  { %2622 = vmatprep.subr.bf16.mxu1 %v2880_v3  ;;  %195 = vst.msk [vmem:[#allocation2 + $0x38] sm:$0xff] %vm187_vm3, %v184_v39  ;;  %v198_v42 = vld [vmem:[#allocation2 + $0x10] sm:$0xff] }
  0xf8   :  { %194 = vst.msk [vmem:[#allocation2 + $0x30] sm:$0xff] %vm187_vm3, %v179_v41  ;;  %2400 = vmatprep.mubr.msk.f32.mxu1 %vm187_vm3, %v198_v42  ;;  %v426_v44 = vpop.f32.mrb[8].mxu0 }
  0xf9   :  { %2401 = vmatmul.mubr.msk.f32.gmra.mrb[2].mxu1 %vm187_vm3, %v199_v43  ;;  %v2419_v45 = vpop.f32.mrb[9].mxu0 }
  0xfa   :  { %2624 = vmatpush3.bf16.msra.mxu1 %v2975_v18  ;;  %v201_v47 = vld [vmem:[#allocation2 + $0x28] sm:$0xff] }
  0xfb   :  { %2631 = vmatprep.subr.bf16.mxu1 %v2880_v3  ;;  %v200_v46 = vld [vmem:[#allocation2 + $0x20] sm:$0xff] }
  0xfc   :  { %2403 = vmatprep.mubr.msk.f32.mxu1 %vm187_vm3, %v200_v46 }
  0xfd   :  { %2404 = vmatmul.mubr.msk.f32.gmra.mrb[4].mxu1 %vm187_vm3, %v201_v47 }
  0xfe   :  { %v203_v49 = vld [vmem:[#allocation2 + $0x38] sm:$0xff] }
  0xff   :  { %v202_v48 = vld [vmem:[#allocation2 + $0x30] sm:$0xff] }
 0x100   :  { %2406 = vmatprep.mubr.msk.f32.mxu1 %vm187_vm3, %v202_v48 }
 0x101   :  { %2407 = vmatmul.mubr.msk.f32.gmra.mrb[6].mxu1 %vm187_vm3, %v203_v49 }
 0x102   :  { %2428 = vmatprep.mubr.msk.f32.mxu1 %vm2881_vm2, %v2882_v22 }
 0x1c8   :  { %v2399_v51 = vpop.f32.mrb[0].mxu1 }
 0x1c9   :  { %v305_v52 = vpop.f32.mrb[1].mxu1  ;;  %v311_v13 = vadd.f32 %v2399_v51, %v3026_v50 }
 0x1ca   :  { %v306_v53 = vadd.f32 %v3026_v50, %v305_v52 }
 0x1cc   :  { %v430_v54 = vadd.f32 %v426_v44, %v306_v53  ;;  %v3030_v56 = vpop.f32.mrb[2].mxu1 }
 0x1cd   :  { %v3032_v57 = vpop.f32.mrb[3].mxu1  ;;  %v321_v52 = vadd.f32 %v3030_v56, %v3026_v50 }
 0x1ce   :  { %2725 = vtanh.f32 %v430_v54  ;;  %v2211_v62 = vmul.f32 -1.442695, %v430_v54  ;;  %v316_v33 = vadd.f32 %v3026_v50, %v3032_v57 }
 0x1d0   :  { %v3034_v58 = vpop.f32.mrb[4].mxu1  ;;  %2727 = vpow2.f32 %v2211_v62 }
 0x1d1   :  { %v3036_v59 = vpop.f32.mrb[5].mxu1 }
 0x1d4   :  { %v3038_v60 = vpop.f32.mrb[6].mxu1 }
 0x1d5   :  { %v3040_v61 = vpop.f32.mrb[7].mxu1 }
 0x1d8   :  { %v2726_v55 = vpop.eup %2725 }
 0x1d9   :  { %440 = vrot.lane.b32.xlu0 %v2726_v55, %s2883_s13 }
 0x1da   :  { %v2728_v63 = vpop.eup %2727 }
 0x1db   :  { %v434_v0 = vadd.f32 1.0, %v2728_v63 }
 0x1dd   :  { %2729 = vrcp.f32 %v434_v0 }
 0x1e7   :  { %v2730_v1 = vpop.eup %2729 }
 0x1e8   :  { %v438_v5 = vmul.f32 0.0, %v2730_v1 }
 0x24b   :  { %v441_v2 = vpop.permute.xlu0 %440 }
 0x24c   :  { %v443_v4 = vmul.f32 %v2730_v1, %v441_v2 }
 0x24e   :  { %445 = vrot.lane.b32.xlu0 %v443_v4, %s2883_s13 }
 0x2c0   :  { %v446_v6 = vpop.permute.xlu0 %445 }
 0x2c1   :  { %v448_v7 = vadd.f32 %v446_v6, %v438_v5 }
 0x2c3   :  { %2731 = vtanh.f32 %v448_v7 }
 0x2cd   :  { %v2732_v8 = vpop.eup %2731 }
 0x2ce   :  { %451 = vrot.lane.b32.xlu1 %v2732_v8, %s2883_s13 }
 0x340   :  { %v452_v9 = vpop.permute.xlu1 %451 }
 0x341   :  { %v454_v10 = vmul.f32 %v2730_v1, %v452_v9 }
 0x343   :  { %456 = vrot.lane.b32.xlu1 %v454_v10, %s2884_s14 }
 0x3b5   :  { %v457_v11 = vpop.permute.xlu1 %456 }
 0x3b6   :  { %459 = vst.msk [vmem:[#allocation2] sm:$0xff] %vm187_vm3, %v457_v11  ;;  %2429 = vmatmul.mubr.msk.f32.vlgmr.msra.gmra.mrb[8].mxu1 %vm187_vm3, %v457_v11  ;;  %v326_v11 = vadd.f32 %v3026_v50, %v3036_v59 }
 0x3b7   :  { %2633 = vmatpush3.bf16.msra.mxu1 %v2961_v12  ;;  %2450 = vmatprep.mubr.msk.f32.mxu1 %vm2881_vm2, %v2882_v22 }
 0x3b8   :  { %2634 = vmatprep.subr.bf16.mxu1 %v2880_v3 }
 0x3bb   :  { %2636 = vmatpush3.bf16.msra.mxu1 %v2975_v18 }
 0x3bc   :  { %2643 = vmatprep.subr.bf16.mxu1 %v2880_v3 }
 0x489   :  { %v530_v14 = vpop.f32.mrb[8].mxu1 }
 0x48a   :  { %v534_v15 = vadd.f32 %v530_v14, %v311_v13  ;;  %v2430_v16 = vpop.f32.mrb[9].mxu1 }
 0x48c   :  { %2733 = vtanh.f32 %v534_v15  ;;  %v2213_v19 = vmul.f32 -1.442695, %v534_v15 }
 0x48e   :  { %2735 = vpow2.f32 %v2213_v19 }
 0x496   :  { %v2734_v17 = vpop.eup %2733 }
 0x497   :  { %544 = vrot.lane.b32.xlu0 %v2734_v17, %s2883_s13 }
 0x498   :  { %v2736_v20 = vpop.eup %2735 }
 0x499   :  { %v538_v21 = vadd.f32 1.0, %v2736_v20 }
 0x49b   :  { %2737 = vrcp.f32 %v538_v21 }
 0x4a5   :  { %v2738_v23 = vpop.eup %2737 }
 0x4a6   :  { %v542_v26 = vmul.f32 %v2738_v23, %v448_v7 }
 0x509   :  { %v545_v24 = vpop.permute.xlu0 %544 }
 0x50a   :  { %v547_v25 = vmul.f32 %v2738_v23, %v545_v24 }
 0x50c   :  { %549 = vrot.lane.b32.xlu1 %v547_v25, %s2883_s13 }
 0x57e   :  { %v550_v27 = vpop.permute.xlu1 %549 }
 0x57f   :  { %v552_v28 = vadd.f32 %v550_v27, %v542_v26 }
 0x581   :  { %2739 = vtanh.f32 %v552_v28 }
 0x58b   :  { %v2740_v29 = vpop.eup %2739 }
 0x58c   :  { %555 = vrot.lane.b32.xlu0 %v2740_v29, %s2883_s13 }
 0x5fe   :  { %v556_v30 = vpop.permute.xlu0 %555 }
 0x5ff   :  { %v558_v31 = vmul.f32 %v2738_v23, %v556_v30 }
 0x601   :  { %560 = vrot.lane.b32.xlu1 %v558_v31, %s2884_s14  ;;  %v331_v31 = vadd.f32 %v3034_v58, %v3026_v50 }
 0x673   :  { %v561_v32 = vpop.permute.xlu1 %560 }
 0x674   :  { %564 = vst.msk [vmem:[#allocation2 + $0x8] sm:$0xff] %vm187_vm3, %v561_v32  ;;  %2440 = vmatmul.mubr.msk.f32.vlgmr.msra.gmra.mrb[10].mxu0 %vm187_vm3, %v561_v32 }
 0x675   :  { %2639 = vmatpush3.bf16.msra.mxu0 %v2961_v12  ;;  %2461 = vmatprep.mubr.msk.f32.mxu0 %vm2881_vm2, %v2882_v22 }
 0x676   :  { %2640 = vmatprep.subr.bf16.mxu0 %v2880_v3 }
 0x679   :  { %2642 = vmatpush3.bf16.msra.mxu0 %v2975_v18 }
 0x67a   :  { %2649 = vmatprep.subr.bf16.mxu0 %v2880_v3 }
 0x747   :  { %v635_v34 = vpop.f32.mrb[10].mxu0 }
 0x748   :  { %v639_v35 = vadd.f32 %v635_v34, %v316_v33  ;;  %v2441_v36 = vpop.f32.mrb[11].mxu0 }
 0x74a   :  { %2741 = vtanh.f32 %v639_v35  ;;  %v2215_v38 = vmul.f32 -1.442695, %v639_v35 }
 0x74c   :  { %2743 = vpow2.f32 %v2215_v38 }
 0x754   :  { %v2742_v37 = vpop.eup %2741 }
 0x755   :  { %649 = vrot.lane.b32.xlu0 %v2742_v37, %s2883_s13 }
 0x756   :  { %v2744_v39 = vpop.eup %2743 }
 0x757   :  { %v643_v40 = vadd.f32 1.0, %v2744_v39 }
 0x759   :  { %2745 = vrcp.f32 %v643_v40 }
 0x763   :  { %v2746_v41 = vpop.eup %2745 }
 0x764   :  { %v647_v44 = vmul.f32 %v2746_v41, %v552_v28 }
 0x7c7   :  { %v650_v42 = vpop.permute.xlu0 %649 }
 0x7c8   :  { %v652_v43 = vmul.f32 %v2746_v41, %v650_v42  ;;  %v2226_v42 = vld [vmem:[%s3314_s3 + $0x20] sm:$0xff] }
 0x7ca   :  { %654 = vrot.lane.b32.xlu1 %v652_v43, %s2883_s13  ;;  %v2227_v43 = vld [vmem:[%s3314_s3 + $0x28] sm:$0xff] }
 0x83c   :  { %v655_v45 = vpop.permute.xlu1 %654 }
 0x83d   :  { %v657_v46 = vadd.f32 %v655_v45, %v647_v44  ;;  %v2661_v44 = vpack.c.bf16 %v2227_v43, %v2226_v42 }
 0x83f   :  { %2747 = vtanh.f32 %v657_v46 }
 0x849   :  { %v2748_v47 = vpop.eup %2747 }
 0x84a   :  { %660 = vrot.lane.b32.xlu0 %v2748_v47, %s2883_s13 }
 0x8bc   :  { %v661_v48 = vpop.permute.xlu0 %660 }
 0x8bd   :  { %v663_v49 = vmul.f32 %v2746_v41, %v661_v48  ;;  %v2228_v48 = vld [vmem:[%s3314_s3 + $0x30] sm:$0xff] }
 0x8bf   :  { %665 = vrot.lane.b32.xlu1 %v663_v49, %s2884_s14  ;;  %v2229_v49 = vld [vmem:[%s3314_s3 + $0x38] sm:$0xff] }
 0x931   :  { %v666_v51 = vpop.permute.xlu1 %665 }
 0x932   :  { %669 = vst.msk [vmem:[#allocation2 + $0x10] sm:$0xff] %vm187_vm3, %v666_v51  ;;  %2451 = vmatmul.mubr.msk.f32.vlgmr.msra.gmra.mrb[10].mxu1 %vm187_vm3, %v666_v51  ;;  %v2665_v51 = vpack.c.bf16 %v2229_v49, %v2228_v48 }
 0x933   :  { %2645 = vmatpush3.bf16.msra.mxu1 %v2961_v12  ;;  %2472 = vmatprep.mubr.msk.f32.mxu1 %vm2881_vm2, %v2882_v22 }
 0x934   :  { %2646 = vmatprep.subr.bf16.mxu1 %v2880_v3 }
 0x937   :  { %2648 = vmatpush3.bf16.msra.mxu1 %v2975_v18 }
 0x938   :  { %2655 = vmatprep.subr.bf16.mxu1 %v2880_v3 }
 0xa05   :  { %v740_v53 = vpop.f32.mrb[10].mxu1 }
 0xa06   :  { %v744_v54 = vadd.f32 %v740_v53, %v321_v52  ;;  %v2452_v55 = vpop.f32.mrb[11].mxu1  ;;  %v1195_v53 = vld [vmem:[#allocation2] sm:$0xff] }
 0xa07   :  { %v1197_v55 = vld [vmem:[#allocation2 + $0x10] sm:$0xff] }
 0xa08   :  { %2749 = vtanh.f32 %v744_v54  ;;  %v2217_v62 = vmul.f32 -1.442695, %v744_v54  ;;  %v1196_v54 = vld [vmem:[#allocation2 + $0x8] sm:$0xff] }
 0xa0a   :  { %2751 = vpow2.f32 %v2217_v62 }
 0xa12   :  { %v2750_v57 = vpop.eup %2749 }
 0xa13   :  { %754 = vrot.lane.b32.xlu0 %v2750_v57, %s2883_s13 }
 0xa14   :  { %v2752_v63 = vpop.eup %2751 }
 0xa15   :  { %v748_v0 = vadd.f32 1.0, %v2752_v63 }
 0xa17   :  { %2753 = vrcp.f32 %v748_v0  ;;  %v336_v0 = vadd.f32 %v3026_v50, %v3040_v61 }
 0xa21   :  { %v2754_v1 = vpop.eup %2753 }
 0xa22   :  { %v752_v5 = vmul.f32 %v2754_v1, %v657_v46 }
 0xa85   :  { %v755_v2 = vpop.permute.xlu0 %754 }
 0xa86   :  { %v757_v4 = vmul.f32 %v2754_v1, %v755_v2 }
 0xa88   :  { %759 = vrot.lane.b32.xlu1 %v757_v4, %s2883_s13 }
 0xafa   :  { %v760_v6 = vpop.permute.xlu1 %759 }
 0xafb   :  { %v762_v56 = vadd.f32 %v760_v6, %v752_v5 }
 0xafd   :  { %2755 = vtanh.f32 %v762_v56 }
 0xb07   :  { %v2756_v7 = vpop.eup %2755 }
 0xb08   :  { %765 = vrot.lane.b32.xlu0 %v2756_v7, %s2883_s13 }
 0xb7a   :  { %v766_v8 = vpop.permute.xlu0 %765 }
 0xb7b   :  { %v768_v9 = vmul.f32 %v2754_v1, %v766_v8 }
 0xb7d   :  { %770 = vrot.lane.b32.xlu1 %v768_v9, %s2884_s14 }
 0xbef   :  { %v771_v10 = vpop.permute.xlu1 %770 }
 0xbf0   :  { %774 = vst.msk [vmem:[#allocation2 + $0x18] sm:$0xff] %vm187_vm3, %v771_v10  ;;  %2462 = vmatmul.mubr.msk.f32.vlgmr.msra.gmra.mrb[12].mxu0 %vm187_vm3, %v771_v10 }
 0xbf1   :  { %2651 = vmatpush3.bf16.msra.mxu0 %v2961_v12  ;;  %2483 = vmatprep.mubr.msk.f32.mxu0 %vm2881_vm2, %v2882_v22 }
 0xbf2   :  { %2652 = vmatprep.subr.bf16.mxu0 %v2880_v3 }
 0xbf5   :  { %2654 = vmatpush3.bf16.msra.mxu0 %v2975_v18 }
 0xbf6   :  { %2662 = vmatprep.subr.bf16.mxu0 %v2661_v44 }
 0xbf7   :  { %v1198_v57 = vld [vmem:[#allocation2 + $0x18] sm:$0xff] }
 0xcc3   :  { %v845_v13 = vpop.f32.mrb[12].mxu0 }
 0xcc4   :  { %v849_v14 = vadd.f32 %v845_v13, %v326_v11  ;;  %v2463_v15 = vpop.f32.mrb[13].mxu0 }
 0xcc6   :  { %2757 = vtanh.f32 %v849_v14  ;;  %v2219_v17 = vmul.f32 -1.442695, %v849_v14 }
 0xcc8   :  { %2759 = vpow2.f32 %v2219_v17 }
 0xcd0   :  { %v2758_v16 = vpop.eup %2757 }
 0xcd1   :  { %859 = vrot.lane.b32.xlu0 %v2758_v16, %s2883_s13 }
 0xcd2   :  { %v2760_v19 = vpop.eup %2759 }
 0xcd3   :  { %v853_v20 = vadd.f32 1.0, %v2760_v19 }
 0xcd5   :  { %2761 = vrcp.f32 %v853_v20 }
 0xcdf   :  { %v2762_v21 = vpop.eup %2761 }
 0xce0   :  { %v857_v25 = vmul.f32 %v2762_v21, %v762_v56 }
 0xd43   :  { %v860_v23 = vpop.permute.xlu0 %859 }
 0xd44   :  { %v862_v24 = vmul.f32 %v2762_v21, %v860_v23  ;;  %v1354_v23 = vld [vmem:[#allocation4 + $0x20] sm:$0xff] }
 0xd46   :  { %864 = vrot.lane.b32.xlu1 %v862_v24, %s2883_s13  ;;  %v1355_v24 = vld [vmem:[#allocation4 + $0x28] sm:$0xff] }
 0xdb8   :  { %v865_v26 = vpop.permute.xlu1 %864 }
 0xdb9   :  { %v867_v59 = vadd.f32 %v865_v26, %v857_v25  ;;  %v3152_v25 = vpack.c.bf16 %v1355_v24, %v1354_v23  ;;  %v1356_v26 = vld [vmem:[#allocation4 + $0x30] sm:$0xff] }
 0xdbb   :  { %2763 = vtanh.f32 %v867_v59 }
 0xdc5   :  { %v2764_v27 = vpop.eup %2763 }
 0xdc6   :  { %870 = vrot.lane.b32.xlu0 %v2764_v27, %s2883_s13 }
 0xe38   :  { %v871_v28 = vpop.permute.xlu0 %870 }
 0xe39   :  { %v873_v29 = vmul.f32 %v2762_v21, %v871_v28 }
 0xe3b   :  { %875 = vrot.lane.b32.xlu1 %v873_v29, %s2884_s14 }
 0xead   :  { %v876_v30 = vpop.permute.xlu1 %875 }
 0xeae   :  { %879 = vst.msk [vmem:[#allocation2 + $0x20] sm:$0xff] %vm187_vm3, %v876_v30  ;;  %2473 = vmatmul.mubr.msk.f32.vlgmr.msra.gmra.mrb[12].mxu1 %vm187_vm3, %v876_v30 }
 0xeaf   :  { %2657 = vmatpush3.bf16.msra.mxu1 %v2961_v12  ;;  %2494 = vmatprep.mubr.msk.f32.mxu1 %vm2881_vm2, %v2882_v22 }
 0xeb0   :  { %2658 = vmatprep.subr.bf16.mxu1 %v2880_v3 }
 0xeb3   :  { %2660 = vmatpush3.bf16.msra.mxu1 %v2975_v18 }
 0xeb4   :  { %2669 = vmatprep.subr.bf16.mxu1 %v2880_v3 }
 0xeb5   :  { %v1199_v62 = vld [vmem:[#allocation2 + $0x20] sm:$0xff] }
 0xf81   :  { %v950_v32 = vpop.f32.mrb[12].mxu1 }
 0xf82   :  { %v954_v33 = vadd.f32 %v950_v32, %v331_v31  ;;  %v2474_v34 = vpop.f32.mrb[13].mxu1  ;;  %v341_v32 = vadd.f32 %v3038_v60, %v3026_v50 }
 0xf84   :  { %2765 = vtanh.f32 %v954_v33  ;;  %v2221_v12 = vmul.f32 -1.442695, %v954_v33 }
 0xf86   :  { %2767 = vpow2.f32 %v2221_v12  ;;  %v3182_v12 = vld [vmem:[%s3316_s5 + $0x1] ss:$0 sm:$0xff] }
 0xf8e   :  { %v2766_v35 = vpop.eup %2765 }
 0xf8f   :  { %964 = vrot.lane.b32.xlu0 %v2766_v35, %s2883_s13 }
 0xf90   :  { %v2768_v36 = vpop.eup %2767 }
 0xf91   :  { %v958_v37 = vadd.f32 1.0, %v2768_v36 }
 0xf93   :  { %2769 = vrcp.f32 %v958_v37 }
 0xf9d   :  { %v2770_v38 = vpop.eup %2769 }
 0xf9e   :  { %v962_v40 = vmul.f32 %v2770_v38, %v867_v59  ;;  %v1357_v59 = vld [vmem:[#allocation4 + $0x38] sm:$0xff] }
 0xf9f   :  { %v3156_v27 = vpack.c.bf16 %v1357_v59, %v1356_v26 }
0x1001   :  { %v965_v39 = vpop.permute.xlu0 %964 }
0x1002   :  { %v967_v18 = vmul.f32 %v2770_v38, %v965_v39 }
0x1004   :  { %969 = vrot.lane.b32.xlu1 %v967_v18, %s2883_s13 }
0x1076   :  { %v970_v41 = vpop.permute.xlu1 %969 }
0x1077   :  { %v972_v58 = vadd.f32 %v970_v41, %v962_v40 }
0x1079   :  { %2771 = vtanh.f32 %v972_v58 }
0x1083   :  { %v2772_v45 = vpop.eup %2771 }
0x1084   :  { %975 = vrot.lane.b32.xlu0 %v2772_v45, %s2883_s13 }
0x10f6   :  { %v976_v46 = vpop.permute.xlu0 %975 }
0x10f7   :  { %v978_v47 = vmul.f32 %v2770_v38, %v976_v46 }
0x10f9   :  { %980 = vrot.lane.b32.xlu1 %v978_v47, %s2884_s14 }
0x116b   :  { %v981_v52 = vpop.permute.xlu1 %980 }
0x116c   :  { %984 = vst.msk [vmem:[#allocation2 + $0x28] sm:$0xff] %vm187_vm3, %v981_v52  ;;  %2484 = vmatmul.mubr.msk.f32.vlgmr.msra.gmra.mrb[14].mxu0 %vm187_vm3, %v981_v52 }
0x116d   :  { %2664 = vmatpush3.bf16.msra.mxu0 %v2661_v44  ;;  %2505 = vmatprep.mubr.msk.f32.mxu0 %vm187_vm3, %v1195_v53 }
0x116e   :  { %2666 = vmatprep.subr.bf16.mxu0 %v2665_v51 }
0x1171   :  { %2668 = vmatpush3.bf16.msra.mxu0 %v2665_v51 }
0x1172   :  { %2681 = vmatprep.subr.bf16.mxu0 %v2880_v3 }
0x1173   :  { %v1200_v63 = vld [vmem:[#allocation2 + $0x28] sm:$0xff] }
0x1174   :  { %2506 = vmatmul.mubr.msk.f32.vlgmr.msra.gmra.mrb[16].mxu0 %vm187_vm3, %v1196_v54 }
0x1175   :  { %2508 = vmatprep.mubr.msk.f32.mxu0 %vm187_vm3, %v1197_v55  ;;  %2683 = vmatpush3.bf16.msra.mxu0 %v3152_v25 }
0x1176   :  { %2684 = vmatprep.subr.bf16.mxu0 %v2880_v3 }
0x1178   :  { %2509 = vmatmul.mubr.msk.f32.gmra.mrb[18].mxu0 %vm187_vm3, %v1198_v57 }
0x1179   :  { %2511 = vmatprep.mubr.msk.f32.mxu0 %vm187_vm3, %v1199_v62  ;;  %2686 = vmatpush3.bf16.msra.mxu0 %v3156_v27 }
0x117a   :  { %2693 = vmatprep.subr.bf16.mxu0 %v2880_v3 }
0x117c   :  { %2512 = vmatmul.mubr.msk.f32.gmra.mrb[20].mxu0 %vm187_vm3, %v1200_v63 }
0x123f   :  { %v1055_v1 = vpop.f32.mrb[14].mxu0 }
0x1240   :  { %v1059_v2 = vadd.f32 %v1055_v1, %v336_v0  ;;  %v2485_v4 = vpop.f32.mrb[15].mxu0 }
0x1242   :  { %2773 = vtanh.f32 %v1059_v2  ;;  %v2223_v11 = vmul.f32 -1.442695, %v1059_v2 }
0x1244   :  { %2775 = vpow2.f32 %v2223_v11 }
0x1247   :  { %v3136_v5 = vpop.f32.mrb[16].mxu0 }
0x1248   :  { %v1306_v6 = vpop.f32.mrb[17].mxu0 }
0x1249   :  { %v1307_v36 = vadd.f32 %v3182_v12, %v1306_v6 }
0x124b   :  { %v3138_v56 = vpop.f32.mrb[18].mxu0 }
0x124c   :  { %v2774_v7 = vpop.eup %2773  ;;  %v3140_v8 = vpop.f32.mrb[19].mxu0 }
0x124d   :  { %1069 = vrot.lane.b32.xlu0 %v2774_v7, %s2883_s13  ;;  %v1312_v7 = vadd.f32 %v3136_v5, %v3182_v12 }
0x124e   :  { %v2776_v61 = vpop.eup %2775 }
0x124f   :  { %v3143_v9 = vpop.f32.mrb[20].mxu0  ;;  %v1063_v13 = vadd.f32 1.0, %v2776_v61 }
0x1250   :  { %v3145_v10 = vpop.f32.mrb[21].mxu0 }
0x1251   :  { %2777 = vrcp.f32 %v1063_v13 }
0x125b   :  { %v2778_v14 = vpop.eup %2777 }
0x125c   :  { %v1067_v17 = vmul.f32 %v2778_v14, %v972_v58 }
0x12bf   :  { %v1070_v15 = vpop.permute.xlu0 %1069 }
0x12c0   :  { %v1072_v16 = vmul.f32 %v2778_v14, %v1070_v15 }
0x12c2   :  { %1074 = vrot.lane.b32.xlu1 %v1072_v16, %s2883_s13 }
0x1334   :  { %v1075_v19 = vpop.permute.xlu1 %1074 }
0x1335   :  { %v3148_v20 = vadd.f32 %v1075_v19, %v1067_v17 }
0x1337   :  { %2779 = vtanh.f32 %v3148_v20 }
0x1341   :  { %v2780_v21 = vpop.eup %2779 }
0x1342   :  { %1080 = vrot.lane.b32.xlu0 %v2780_v21, %s2883_s13 }
0x13b4   :  { %v1081_v28 = vpop.permute.xlu0 %1080 }
0x13b5   :  { %v1083_v29 = vmul.f32 %v2778_v14, %v1081_v28 }
0x13b7   :  { %1085 = vrot.lane.b32.xlu1 %v1083_v29, %s2884_s14 }
0x1429   :  { %v1086_v30 = vpop.permute.xlu1 %1085 }
0x142a   :  { %1089 = vst.msk [vmem:[#allocation2 + $0x30] sm:$0xff] %vm187_vm3, %v1086_v30  ;;  %2495 = vmatmul.mubr.msk.f32.vlgmr.msra.gmra.mrb[14].mxu1 %vm187_vm3, %v1086_v30 }
0x142b   :  { %2671 = vmatpush3.bf16.msra.mxu1 %v3152_v25  ;;  %2525 = vmatprep.mubr.msk.f32.mxu1 %vm2881_vm2, %v2882_v22 }
0x142c   :  { %2672 = vmatprep.subr.bf16.mxu1 %v2880_v3 }
0x142f   :  { %2674 = vmatpush3.bf16.msra.mxu1 %v3156_v27 }
0x1430   :  { %2675 = vmatprep.subr.bf16.mxu1 %v2880_v3 }
0x1431   :  { %v1201_v31 = vld [vmem:[#allocation2 + $0x30] sm:$0xff] }
0x1432   :  { %2526 = vmatmul.mubr.f32.vlgmr.msra.gmra.mrb[16].mxu1 %v2882_v22  ;;  %2514 = vmatprep.mubr.msk.f32.mxu0 %vm187_vm3, %v1201_v31 }
0x1433   :  { %2677 = vmatpush3.bf16.msra.mxu1 %v3152_v25  ;;  %2536 = vmatprep.mubr.msk.f32.mxu1 %vm2881_vm2, %v2882_v22 }
0x1434   :  { %2678 = vmatprep.subr.bf16.mxu1 %v2880_v3 }
0x1437   :  { %2680 = vmatpush3.bf16.msra.mxu1 %v3156_v27 }
0x1438   :  { %2687 = vmatprep.subr.bf16.mxu1 %v2880_v3 }
0x14fd   :  { %v1160_v33 = vpop.f32.mrb[14].mxu1 }
0x14fe   :  { %v1164_v34 = vadd.f32 %v1160_v33, %v341_v32  ;;  %v2496_v35 = vpop.f32.mrb[15].mxu1 }
0x1500   :  { %v2225_v48 = vmul.f32 -1.442695, %v1164_v34 }
0x1505   :  { %v1425_v37 = vpop.f32.mrb[16].mxu1 }
0x1506   :  { %v1429_v38 = vadd.f32 %v1425_v37, %v1307_v36  ;;  %v2527_v39 = vpop.f32.mrb[17].mxu1 }
0x1508   :  { %2781 = vtanh.f32 %v1429_v38  ;;  %v2240_v40 = vmul.f32 -1.442695, %v1429_v38 }
0x150a   :  { %2783 = vpow2.f32 %v2240_v40 }
0x1512   :  { %v2782_v18 = vpop.eup %2781 }
0x1513   :  { %1439 = vrot.lane.b32.xlu0 %v2782_v18, %s2883_s13 }
0x1514   :  { %v2784_v50 = vpop.eup %2783 }
0x1515   :  { %v1433_v60 = vadd.f32 1.0, %v2784_v50 }
0x1517   :  { %2785 = vrcp.f32 %v1433_v60 }
0x1521   :  { %v2786_v41 = vpop.eup %2785 }
0x1522   :  { %v1437_v43 = vmul.f32 0.0, %v2786_v41 }
0x1585   :  { %v1440_v58 = vpop.permute.xlu0 %1439 }
0x1586   :  { %v1442_v42 = vmul.f32 %v2786_v41, %v1440_v58 }
0x1588   :  { %1444 = vrot.lane.b32.xlu1 %v1442_v42, %s2883_s13 }
0x15fa   :  { %v1445_v44 = vpop.permute.xlu1 %1444 }
0x15fb   :  { %v1447_v45 = vadd.f32 %v1445_v44, %v1437_v43 }
0x15fd   :  { %2787 = vtanh.f32 %v1447_v45 }
0x15fe   :  { %2789 = vtanh.f32 %v1164_v34  ;;  %v1317_v34 = vadd.f32 %v3182_v12, %v3140_v8 }
0x15ff   :  { %2791 = vpow2.f32 %v2225_v48 }
0x1607   :  { %v2788_v46 = vpop.eup %2787 }
0x1608   :  { %1450 = vrot.lane.b32.xlu0 %v2788_v46, %s2883_s13  ;;  %v2790_v47 = vpop.eup %2789 }
0x1609   :  { %v2792_v49 = vpop.eup %2791 }
0x160a   :  { %v1168_v51 = vadd.f32 1.0, %v2792_v49 }
0x160c   :  { %1174 = vrot.lane.b32.xlu0 %v2790_v47, %s2883_s13  ;;  %2793 = vrcp.f32 %v1168_v51  ;;  %v1322_v47 = vadd.f32 %v3138_v56, %v3182_v12 }
0x1616   :  { %v2794_v54 = vpop.eup %2793 }
0x1617   :  { %v1172_v63 = vmul.f32 %v2794_v54, %v3148_v20 }
0x167a   :  { %v1451_v52 = vpop.permute.xlu0 %1450 }
0x167b   :  { %v1453_v53 = vmul.f32 %v2786_v41, %v1451_v52 }
0x167d   :  { %1455 = vrot.lane.b32.xlu1 %v1453_v53, %s2884_s14 }
0x167e   :  { %v1175_v55 = vpop.permute.xlu0 %1174 }
0x167f   :  { %v1177_v57 = vmul.f32 %v2794_v54, %v1175_v55 }
0x1681   :  { %1179 = vrot.lane.b32.xlu0 %v1177_v57, %s2883_s13 }
0x16ef   :  { %v1456_v62 = vpop.permute.xlu1 %1455 }
0x16f0   :  { %1458 = vst.msk [vmem:[%s3317_s6] sm:$0xff] %vm187_vm3, %v1456_v62  ;;  %2537 = vmatmul.mubr.msk.f32.vlgmr.msra.gmra.mrb[18].mxu1 %vm187_vm3, %v1456_v62 }
0x16f1   :  { %2689 = vmatpush3.bf16.msra.mxu1 %v3152_v25  ;;  %2558 = vmatprep.mubr.msk.f32.mxu1 %vm2881_vm2, %v2882_v22 }
0x16f2   :  { %2690 = vmatprep.subr.bf16.mxu1 %v2880_v3 }
0x16f3   :  { %v1180_v0 = vpop.permute.xlu0 %1179 }
0x16f4   :  { %v1182_v1 = vadd.f32 %v1180_v0, %v1172_v63 }
0x16f5   :  { %2692 = vmatpush3.bf16.msra.mxu1 %v3156_v27 }
0x16f6   :  { %2795 = vtanh.f32 %v1182_v1  ;;  %2699 = vmatprep.subr.bf16.mxu1 %v2880_v3 }
0x1700   :  { %v2796_v2 = vpop.eup %2795 }
0x1701   :  { %1185 = vrot.lane.b32.xlu0 %v2796_v2, %s2883_s13 }
0x1773   :  { %v1186_v4 = vpop.permute.xlu0 %1185 }
0x1774   :  { %v1188_v6 = vmul.f32 %v2794_v54, %v1186_v4 }
0x1776   :  { %1190 = vrot.lane.b32.xlu0 %v1188_v6, %s2884_s14 }
0x17c3   :  { %v1528_v11 = vpop.f32.mrb[18].mxu1 }
0x17c4   :  { %v1532_v61 = vadd.f32 %v1528_v11, %v1312_v7  ;;  %v2538_v13 = vpop.f32.mrb[19].mxu1  ;;  %v1327_v11 = vadd.f32 %v3182_v12, %v3145_v10 }
0x17c6   :  { %2797 = vtanh.f32 %v1532_v61  ;;  %v2242_v17 = vmul.f32 -1.442695, %v1532_v61 }
0x17c8   :  { %2799 = vpow2.f32 %v2242_v17 }
0x17d0   :  { %v2798_v14 = vpop.eup %2797 }
0x17d1   :  { %1542 = vrot.lane.b32.xlu1 %v2798_v14, %s2883_s13 }
0x17d2   :  { %v2800_v19 = vpop.eup %2799 }
0x17d3   :  { %v1536_v5 = vadd.f32 1.0, %v2800_v19 }
0x17d5   :  { %2801 = vrcp.f32 %v1536_v5 }
0x17df   :  { %v2802_v20 = vpop.eup %2801 }
0x17e0   :  { %v1540_v24 = vmul.f32 %v2802_v20, %v1447_v45 }
0x17e8   :  { %v1191_v15 = vpop.permute.xlu0 %1190 }
0x17e9   :  { %1194 = vst.msk [vmem:[#allocation2 + $0x38] sm:$0xff] %vm187_vm3, %v1191_v15 }
0x17f0   :  { %v1202_v16 = vld [vmem:[#allocation2 + $0x38] sm:$0xff] }
0x17f1   :  { %2515 = vmatmul.mubr.msk.f32.gmra.mrb[22].mxu0 %vm187_vm3, %v1202_v16 }
0x17f2   :  { %2547 = vmatprep.mubr.msk.f32.mxu0 %vm2881_vm2, %v2882_v22 }
0x1843   :  { %v1543_v21 = vpop.permute.xlu1 %1542 }
0x1844   :  { %v1545_v23 = vmul.f32 %v2802_v20, %v1543_v21 }
0x1846   :  { %1547 = vrot.lane.b32.xlu1 %v1545_v23, %s2883_s13 }
0x18b8   :  { %v1548_v26 = vpop.permute.xlu1 %1547 }
0x18b9   :  { %v1550_v59 = vadd.f32 %v1548_v26, %v1540_v24 }
0x18bb   :  { %2803 = vtanh.f32 %v1550_v59 }
0x18c4   :  { %v3213_v28 = vpop.f32.mrb[22].mxu0 }
0x18c5   :  { %v2804_v29 = vpop.eup %2803  ;;  %v3215_v30 = vpop.f32.mrb[23].mxu0 }
0x18c6   :  { %1553 = vrot.lane.b32.xlu1 %v2804_v29, %s2883_s13 }
0x1938   :  { %v1554_v31 = vpop.permute.xlu1 %1553 }
0x1939   :  { %v1556_v32 = vmul.f32 %v2802_v20, %v1554_v31 }
0x193b   :  { %1558 = vrot.lane.b32.xlu1 %v1556_v32, %s2884_s14  ;;  %v1332_v32 = vadd.f32 %v3143_v9, %v3182_v12 }
0x19ad   :  { %v1559_v33 = vpop.permute.xlu1 %1558 }
0x19ae   :  { %2243 = vst.msk [vmem:[%s3317_s6 + $0x8] sm:$0xff] %vm187_vm3, %v1559_v33  ;;  %2548 = vmatmul.mubr.msk.f32.vlgmr.msra.gmra.mrb[24].mxu0 %vm187_vm3, %v1559_v33 }
0x19af   :  { %2695 = vmatpush3.bf16.msra.mxu0 %v3152_v25  ;;  %2569 = vmatprep.mubr.msk.f32.mxu0 %vm2881_vm2, %v2882_v22 }
0x19b0   :  { %2696 = vmatprep.subr.bf16.mxu0 %v2880_v3 }
0x19b3   :  { %2698 = vmatpush3.bf16.msra.mxu0 %v3156_v27 }
0x19b4   :  { %2705 = vmatprep.subr.bf16.mxu0 %v2880_v3 }
0x1a81   :  { %v1632_v35 = vpop.f32.mrb[24].mxu0 }
0x1a82   :  { %v1636_v36 = vadd.f32 %v1632_v35, %v1317_v34  ;;  %v2549_v37 = vpop.f32.mrb[25].mxu0 }
0x1a84   :  { %2805 = vtanh.f32 %v1636_v36  ;;  %v2245_v39 = vmul.f32 -1.442695, %v1636_v36 }
0x1a86   :  { %2807 = vpow2.f32 %v2245_v39 }
0x1a8e   :  { %v2806_v38 = vpop.eup %2805 }
0x1a8f   :  { %1646 = vrot.lane.b32.xlu0 %v2806_v38, %s2883_s13 }
0x1a90   :  { %v2808_v18 = vpop.eup %2807 }
0x1a91   :  { %v1640_v40 = vadd.f32 1.0, %v2808_v18 }
0x1a93   :  { %2809 = vrcp.f32 %v1640_v40 }
0x1a9d   :  { %v2810_v50 = vpop.eup %2809 }
0x1a9e   :  { %v1644_v58 = vmul.f32 %v2810_v50, %v1550_v59 }
0x1b01   :  { %v1647_v60 = vpop.permute.xlu0 %1646 }
0x1b02   :  { %v1649_v41 = vmul.f32 %v2810_v50, %v1647_v60 }
0x1b04   :  { %1651 = vrot.lane.b32.xlu1 %v1649_v41, %s2883_s13 }
0x1b76   :  { %v1652_v42 = vpop.permute.xlu1 %1651 }
0x1b77   :  { %v1654_v8 = vadd.f32 %v1652_v42, %v1644_v58  ;;  %v1337_v58 = vadd.f32 %v3182_v12, %v3215_v30 }
0x1b79   :  { %2811 = vtanh.f32 %v1654_v8 }
0x1b83   :  { %v2812_v43 = vpop.eup %2811 }
0x1b84   :  { %1657 = vrot.lane.b32.xlu0 %v2812_v43, %s2883_s13 }
0x1bf6   :  { %v1658_v44 = vpop.permute.xlu0 %1657 }
0x1bf7   :  { %v1660_v45 = vmul.f32 %v2810_v50, %v1658_v44 }
0x1bf9   :  { %1662 = vrot.lane.b32.xlu1 %v1660_v45, %s2884_s14 }
0x1c6b   :  { %v1663_v46 = vpop.permute.xlu1 %1662 }
0x1c6c   :  { %2246 = vst.msk [vmem:[%s3317_s6 + $0x10] sm:$0xff] %vm187_vm3, %v1663_v46  ;;  %2559 = vmatmul.mubr.msk.f32.vlgmr.msra.gmra.mrb[20].mxu1 %vm187_vm3, %v1663_v46 }
0x1c6d   :  { %2701 = vmatpush3.bf16.msra.mxu1 %v3152_v25  ;;  %2580 = vmatprep.mubr.msk.f32.mxu1 %vm2881_vm2, %v2882_v22 }
0x1c6e   :  { %2702 = vmatprep.subr.bf16.mxu1 %v2880_v3 }
0x1c71   :  { %2704 = vmatpush3.bf16.msra.mxu1 %v3156_v27 }
0x1c72   :  { %2711 = vmatprep.subr.bf16.mxu1 %v2880_v3 }
0x1d3f   :  { %v1736_v48 = vpop.f32.mrb[20].mxu1 }
0x1d40   :  { %v1740_v49 = vadd.f32 %v1736_v48, %v1322_v47  ;;  %v2560_v51 = vpop.f32.mrb[21].mxu1 }
0x1d42   :  { %2813 = vtanh.f32 %v1740_v49  ;;  %v2248_v53 = vmul.f32 -1.442695, %v1740_v49 }
0x1d44   :  { %2815 = vpow2.f32 %v2248_v53 }
0x1d4c   :  { %v2814_v52 = vpop.eup %2813 }
0x1d4d   :  { %1750 = vrot.lane.b32.xlu0 %v2814_v52, %s2883_s13 }
0x1d4e   :  { %v2816_v54 = vpop.eup %2815 }
0x1d4f   :  { %v1744_v55 = vadd.f32 1.0, %v2816_v54 }
0x1d51   :  { %2817 = vrcp.f32 %v1744_v55 }
0x1d5b   :  { %v2818_v57 = vpop.eup %2817 }
0x1d5c   :  { %v1748_v0 = vmul.f32 %v2818_v57, %v1654_v8 }
0x1dbf   :  { %v1751_v62 = vpop.permute.xlu0 %1750 }
0x1dc0   :  { %v1753_v63 = vmul.f32 %v2818_v57, %v1751_v62 }
0x1dc2   :  { %1755 = vrot.lane.b32.xlu1 %v1753_v63, %s2883_s13  ;;  %v1342_v63 = vadd.f32 %v3213_v28, %v3182_v12 }
0x1e34   :  { %v1756_v1 = vpop.permute.xlu1 %1755 }
0x1e35   :  { %v1758_v56 = vadd.f32 %v1756_v1, %v1748_v0 }
0x1e37   :  { %2819 = vtanh.f32 %v1758_v56 }
0x1e41   :  { %v2820_v2 = vpop.eup %2819 }
0x1e42   :  { %1761 = vrot.lane.b32.xlu0 %v2820_v2, %s2883_s13 }
0x1eb4   :  { %v1762_v4 = vpop.permute.xlu0 %1761 }
0x1eb5   :  { %v1764_v6 = vmul.f32 %v2818_v57, %v1762_v4 }
0x1eb7   :  { %1766 = vrot.lane.b32.xlu1 %v1764_v6, %s2884_s14 }
0x1f29   :  { %v1767_v7 = vpop.permute.xlu1 %1766 }
0x1f2a   :  { %2249 = vst.msk [vmem:[%s3317_s6 + $0x18] sm:$0xff] %vm187_vm3, %v1767_v7  ;;  %2570 = vmatmul.mubr.msk.f32.vlgmr.msra.gmra.mrb[26].mxu0 %vm187_vm3, %v1767_v7 }
0x1f2b   :  { %2707 = vmatpush3.bf16.msra.mxu0 %v3152_v25  ;;  %2591 = vmatprep.mubr.msk.f32.mxu0 %vm2881_vm2, %v2882_v22 }
0x1f2c   :  { %2708 = vmatprep.subr.bf16.mxu0 %v2880_v3 }
0x1f2f   :  { %2710 = vmatpush3.bf16.msra.mxu0 %v3156_v27 }
0x1ffd   :  { %v1840_v61 = vpop.f32.mrb[26].mxu0 }
0x1ffe   :  { %v1844_v13 = vadd.f32 %v1840_v61, %v1327_v11  ;;  %v2571_v14 = vpop.f32.mrb[27].mxu0 }
0x2000   :  { %2821 = vtanh.f32 %v1844_v13  ;;  %v2251_v16 = vmul.f32 -1.442695, %v1844_v13 }
0x2002   :  { %2823 = vpow2.f32 %v2251_v16 }
0x200a   :  { %v2822_v15 = vpop.eup %2821 }
0x200b   :  { %1854 = vrot.lane.b32.xlu0 %v2822_v15, %s2883_s13 }
0x200c   :  { %v2824_v17 = vpop.eup %2823 }
0x200d   :  { %v1848_v19 = vadd.f32 1.0, %v2824_v17 }
0x200f   :  { %2825 = vrcp.f32 %v1848_v19 }
0x2019   :  { %v2826_v5 = vpop.eup %2825 }
0x201a   :  { %v1852_v23 = vmul.f32 %v2826_v5, %v1758_v56 }
0x207d   :  { %v1855_v20 = vpop.permute.xlu0 %1854 }
0x207e   :  { %v1857_v21 = vmul.f32 %v2826_v5, %v1855_v20 }
0x2080   :  { %1859 = vrot.lane.b32.xlu1 %v1857_v21, %s2883_s13 }
0x20f2   :  { %v1860_v24 = vpop.permute.xlu1 %1859 }
0x20f3   :  { %v1862_v10 = vadd.f32 %v1860_v24, %v1852_v23 }
0x20f5   :  { %2827 = vtanh.f32 %v1862_v10 }
0x20ff   :  { %v2828_v26 = vpop.eup %2827 }
0x2100   :  { %1865 = vrot.lane.b32.xlu0 %v2828_v26, %s2883_s13 }
0x2172   :  { %v1866_v59 = vpop.permute.xlu0 %1865 }
0x2173   :  { %v1868_v29 = vmul.f32 %v2826_v5, %v1866_v59 }
0x2175   :  { %1870 = vrot.lane.b32.xlu1 %v1868_v29, %s2884_s14 }
0x21e7   :  { %v1871_v31 = vpop.permute.xlu1 %1870 }
0x21e8   :  { %2252 = vst.msk [vmem:[%s3317_s6 + $0x20] sm:$0xff] %vm187_vm3, %v1871_v31  ;;  %2581 = vmatmul.mubr.msk.f32.vlgmr.msra.gmra.mrb[22].mxu1 %vm187_vm3, %v1871_v31 }
0x21e9   :  { %2713 = vmatpush3.bf16.msra.mxu1 %v3152_v25  ;;  %2602 = vmatprep.mubr.msk.f32.mxu1 %vm2881_vm2, %v2882_v22 }
0x21ea   :  { %2714 = vmatprep.subr.bf16.mxu1 %v2880_v3 }
0x21ed   :  { %2716 = vmatpush3.bf16.msra.mxu1 %v3156_v27 }
0x22bb   :  { %v1944_v33 = vpop.f32.mrb[22].mxu1 }
0x22bc   :  { %v1948_v34 = vadd.f32 %v1944_v33, %v1332_v32  ;;  %v2582_v35 = vpop.f32.mrb[23].mxu1 }
0x22be   :  { %2829 = vtanh.f32 %v1948_v34  ;;  %v2254_v37 = vmul.f32 -1.442695, %v1948_v34 }
0x22c0   :  { %2831 = vpow2.f32 %v2254_v37 }
0x22c8   :  { %v2830_v36 = vpop.eup %2829 }
0x22c9   :  { %1958 = vrot.lane.b32.xlu0 %v2830_v36, %s2883_s13 }
0x22ca   :  { %v2832_v25 = vpop.eup %2831 }
0x22cb   :  { %v1952_v38 = vadd.f32 1.0, %v2832_v25 }
0x22cd   :  { %2833 = vrcp.f32 %v1952_v38 }
0x22d7   :  { %v2834_v22 = vpop.eup %2833 }
0x22d8   :  { %v1956_v27 = vmul.f32 %v2834_v22, %v1862_v10 }
0x233b   :  { %v1959_v39 = vpop.permute.xlu0 %1958 }
0x233c   :  { %v1961_v3 = vmul.f32 %v2834_v22, %v1959_v39 }
0x233e   :  { %1963 = vrot.lane.b32.xlu1 %v1961_v3, %s2883_s13 }
0x23b0   :  { %v1964_v18 = vpop.permute.xlu1 %1963 }
0x23b1   :  { %v1966_v9 = vadd.f32 %v1964_v18, %v1956_v27 }
0x23b3   :  { %2835 = vtanh.f32 %v1966_v9 }
0x23bd   :  { %v2836_v40 = vpop.eup %2835 }
0x23be   :  { %1969 = vrot.lane.b32.xlu0 %v2836_v40, %s2883_s13 }
0x2430   :  { %v1970_v50 = vpop.permute.xlu0 %1969 }
0x2431   :  { %v1972_v60 = vmul.f32 %v2834_v22, %v1970_v50 }
0x2433   :  { %1974 = vrot.lane.b32.xlu1 %v1972_v60, %s2884_s14 }
0x24a5   :  { %v1975_v41 = vpop.permute.xlu1 %1974 }
0x24a6   :  { %2255 = vst.msk [vmem:[%s3317_s6 + $0x28] sm:$0xff] %vm187_vm3, %v1975_v41  ;;  %2592 = vmatmul.mubr.msk.f32.vlgmr.msra.gmra.mrb[28].mxu0 %vm187_vm3, %v1975_v41 }
0x2579   :  { %v2048_v42 = vpop.f32.mrb[28].mxu0 }
0x257a   :  { %v2052_v8 = vadd.f32 %v2048_v42, %v1337_v58  ;;  %v2593_v43 = vpop.f32.mrb[29].mxu0 }
0x257c   :  { %2837 = vtanh.f32 %v2052_v8  ;;  %v2257_v45 = vmul.f32 -1.442695, %v2052_v8 }
0x257e   :  { %2839 = vpow2.f32 %v2257_v45 }
0x2586   :  { %v2838_v44 = vpop.eup %2837 }
0x2587   :  { %2062 = vrot.lane.b32.xlu0 %v2838_v44, %s2883_s13 }
0x2588   :  { %v2840_v46 = vpop.eup %2839 }
0x2589   :  { %v2056_v47 = vadd.f32 1.0, %v2840_v46 }
0x258b   :  { %2841 = vrcp.f32 %v2056_v47 }
0x2595   :  { %v2842_v48 = vpop.eup %2841 }
0x2596   :  { %v2060_v52 = vmul.f32 %v2842_v48, %v1966_v9 }
0x25f9   :  { %v2063_v49 = vpop.permute.xlu0 %2062 }
0x25fa   :  { %v2065_v51 = vmul.f32 %v2842_v48, %v2063_v49 }
0x25fc   :  { %2067 = vrot.lane.b32.xlu1 %v2065_v51, %s2883_s13 }
0x266e   :  { %v2068_v53 = vpop.permute.xlu1 %2067 }
0x266f   :  { %v2070_v30 = vadd.f32 %v2068_v53, %v2060_v52 }
0x2671   :  { %2843 = vtanh.f32 %v2070_v30 }
0x267b   :  { %v2844_v54 = vpop.eup %2843 }
0x267c   :  { %2073 = vrot.lane.b32.xlu0 %v2844_v54, %s2883_s13 }
0x26ee   :  { %v2074_v55 = vpop.permute.xlu0 %2073 }
0x26ef   :  { %v2076_v57 = vmul.f32 %v2842_v48, %v2074_v55 }
0x26f1   :  { %2078 = vrot.lane.b32.xlu1 %v2076_v57, %s2884_s14 }
0x2763   :  { %v2079_v62 = vpop.permute.xlu1 %2078 }
0x2764   :  { %2258 = vst.msk [vmem:[%s3317_s6 + $0x30] sm:$0xff] %vm187_vm3, %v2079_v62  ;;  %2603 = vmatmul.mubr.msk.f32.vlgmr.msra.gmra.mrb[24].mxu1 %vm187_vm3, %v2079_v62 }
0x2837   :  { %v2152_v0 = vpop.f32.mrb[24].mxu1 }
0x2838   :  { %v2156_v1 = vadd.f32 %v2152_v0, %v1342_v63  ;;  %v2604_v56 = vpop.f32.mrb[25].mxu1 }
0x283a   :  { %2845 = vtanh.f32 %v2156_v1  ;;  %v2260_v4 = vmul.f32 -1.442695, %v2156_v1 }
0x283c   :  { %2847 = vpow2.f32 %v2260_v4 }
0x2844   :  { %v2846_v2 = vpop.eup %2845 }
0x2845   :  { %2166 = vrot.lane.b32.xlu0 %v2846_v2, %s2883_s13 }
0x2846   :  { %v2848_v6 = vpop.eup %2847 }
0x2847   :  { %v2160_v7 = vadd.f32 1.0, %v2848_v6 }
0x2849   :  { %2849 = vrcp.f32 %v2160_v7 }
0x2853   :  { %v2850_v11 = vpop.eup %2849 }
0x2854   :  { %v2164_v14 = vmul.f32 %v2850_v11, %v2070_v30 }
0x28b7   :  { %v2167_v61 = vpop.permute.xlu0 %2166 }
0x28b8   :  { %v2169_v13 = vmul.f32 %v2850_v11, %v2167_v61 }
0x28ba   :  { %2171 = vrot.lane.b32.xlu1 %v2169_v13, %s2883_s13 }
0x292c   :  { %v2172_v15 = vpop.permute.xlu1 %2171 }
0x292d   :  { %v2174_v12 = vadd.f32 %v2172_v15, %v2164_v14 }
0x292f   :  { %2851 = vtanh.f32 %v2174_v12 }
0x2939   :  { %v2852_v28 = vpop.eup %2851 }
0x293a   :  { %2177 = vrot.lane.b32.xlu0 %v2852_v28, %s2883_s13 }
0x29ac   :  { %v2178_v16 = vpop.permute.xlu0 %2177 }
0x29ad   :  { %v2180_v17 = vmul.f32 %v2850_v11, %v2178_v16 }
0x29af   :  { %2182 = vrot.lane.b32.xlu1 %v2180_v17, %s2884_s14 }
0x2a21   :  { %v2183_v19 = vpop.permute.xlu1 %2182 }
0x2a22   :  { %2261 = vst.msk [vmem:[%s3317_s6 + $0x38] sm:$0xff] %vm187_vm3, %v2183_v19 }
0x2a23   :  { %2191 = vsyncpa [#allocation5], 1 }

</bundles_post_ra>
